<compile_context>
chip_gen: v7x
topology: tpu7x:2x2x1
jax: 0.10.0
libtpu: 0.0.40
codegen_flags: <defaults>
</compile_context>

<pallas_src>
import functools

import jax
import jax.numpy as jnp
from jax import lax
from jax.experimental import pallas as pl
from jax.experimental.pallas import tpu as pltpu


def _round_up(x, m):
    return (x + m - 1) // m * m


def _gru_fc_kernel(x_ref, wih_ref, whh_ref, bih_ref, bhh_ref,
                   wfc_ref, bfc_ref, out_ref, gi_scr, h_scr, *, T, Bp, Hp):
    """Single invocation: input projection for all T, then the sequential GRU + FC head.

    x_ref   : (T*Bp, Dp)   time-major, batch-flattened, padded input
    wih_ref : (Dp, 3*Hp)   W_ih^T (per-gate padded)
    whh_ref : (Hp, 3*Hp)   W_hh^T (per-gate padded)
    bih_ref : (1, 3*Hp)
    bhh_ref : (1, 3*Hp)
    wfc_ref : (1, Hp)
    bfc_ref : (1, 128)
    out_ref : (Bp, 128)    lane-dense result slab (same scalar broadcast over lanes)
    gi_scr  : (T*Bp, 3*Hp) VMEM scratch for the hoisted input projection
    h_scr   : (Bp, Hp)     VMEM scratch hidden state
    """
    # Hoisted input projection: one big MXU matmul, independent of the recurrence.
    gi_scr[...] = (jnp.dot(x_ref[...], wih_ref[...],
                           preferred_element_type=jnp.float32) + bih_ref[...])

    h_scr[...] = jnp.zeros_like(h_scr)

    whh = whh_ref[...]
    bhh = bhh_ref[...]

    def step(t, carry):
        h = h_scr[...]                                   # (Bp, Hp)
        row = pl.multiple_of(t * Bp, Bp)                 # sublane-aligned slice start
        gi = gi_scr[pl.ds(row, Bp), :]                   # (Bp, 3Hp)
        gh = jnp.dot(h, whh, preferred_element_type=jnp.float32) + bhh

        # Hp is a multiple of 128 -> these lane slices are whole-vreg / 128-aligned.
        r = jax.nn.sigmoid(gi[:, 0:Hp] + gh[:, 0:Hp])
        z = jax.nn.sigmoid(gi[:, Hp:2 * Hp] + gh[:, Hp:2 * Hp])
        n = jnp.tanh(gi[:, 2 * Hp:3 * Hp] + r * gh[:, 2 * Hp:3 * Hp])
        h_scr[...] = (1.0 - z) * n + z * h
        return carry

    lax.fori_loop(0, T, step, 0, unroll=True)

    # FC head: VPU multiply + lane reduction instead of an N=1 MXU matmul.
    h_last = h_scr[...]
    res = jnp.sum(h_last * wfc_ref[...], axis=-1, keepdims=True)   # (Bp, 1)
    out_ref[...] = res + bfc_ref[...]                              # (Bp, 128) lane-dense


def falsifier_forward(state_features_seq, action_seq, params, *,
                      action_dim, hidden_size):
    """JAX wrapper mirroring FalsifierModel.forward.

    state_features_seq: (B, T, F) float32
    action_seq:         (B, T) or (B, T, 1) int32
    returns:            (B,) float32
    """
    if action_seq.ndim > 2 and action_seq.shape[-1] == 1:
        action_seq = jnp.squeeze(action_seq, axis=-1)
    action_one_hot = jax.nn.one_hot(action_seq, action_dim, dtype=jnp.float32)
    input_seq = jnp.concatenate([state_features_seq, action_one_hot], axis=-1)  # (B,T,Din)

    B, T, Din = input_seq.shape
    H = hidden_size

    # Pad toward hardware granules (sublanes=8, lanes=128).
    Bp = _round_up(B, 8)
    Hp = _round_up(H, 128)
    Dp = _round_up(Din, 128)

    # Time-major, padded, flattened to (T*Bp, Dp) for the one-shot input projection.
    x_tbd = jnp.transpose(input_seq, (1, 0, 2))                     # (T, B, Din)
    x_pad = jnp.zeros((T, Bp, Dp), jnp.float32).at[:, :B, :Din].set(x_tbd)
    x2d = x_pad.reshape(T * Bp, Dp)

    def pad_gates(w2d, cols_to):
        # w2d: (3H, X)  ->  (3Hp, cols_to); each gate block (r,z,n) padded to Hp rows.
        X = w2d.shape[1]
        out = jnp.zeros((3 * Hp, cols_to), jnp.float32)
        for g in range(3):
            out = out.at[g * Hp:g * Hp + H, :X].set(w2d[g * H:(g + 1) * H])
        return out

    def pad_gate_bias(b):
        out = jnp.zeros((3 * Hp,), jnp.float32)
        for g in range(3):
            out = out.at[g * Hp:g * Hp + H].set(b[g * H:(g + 1) * H])
        return out.reshape(1, 3 * Hp)

    w_ih_t = pad_gates(params["w_ih"], Dp).T          # (Dp, 3Hp)
    w_hh_t = pad_gates(params["w_hh"], Hp).T          # (Hp, 3Hp)
    b_ih = pad_gate_bias(params["b_ih"])              # (1, 3Hp)
    b_hh = pad_gate_bias(params["b_hh"])              # (1, 3Hp)
    w_fc_row = jnp.zeros((1, Hp), jnp.float32).at[0, :H].set(params["w_fc"][0])  # (1, Hp)
    b_fc_row = jnp.full((1, 128), params["b_fc"][0], jnp.float32)                # (1, 128)

    kernel = functools.partial(_gru_fc_kernel, T=T, Bp=Bp, Hp=Hp)

    vmem = pl.BlockSpec(memory_space=pltpu.MemorySpace.VMEM)
    out = pl.pallas_call(
        kernel,
        out_shape=jax.ShapeDtypeStruct((Bp, 128), jnp.float32),
        in_specs=[vmem] * 7,
        out_specs=vmem,
        scratch_shapes=[
            pltpu.VMEM((T * Bp, 3 * Hp), jnp.float32),   # hoisted input projection GI
            pltpu.VMEM((Bp, Hp), jnp.float32),           # hidden state
        ],
    )(x2d, w_ih_t, w_hh_t, b_ih, b_hh, w_fc_row, b_fc_row)

    return out[:B, 0]


def reference_forward(state_features_seq, action_seq, params, *,
                      action_dim, hidden_size):
    """Pure-JAX reference (PyTorch GRU semantics) for correctness checking."""
    if action_seq.ndim > 2 and action_seq.shape[-1] == 1:
        action_seq = jnp.squeeze(action_seq, axis=-1)
    oh = jax.nn.one_hot(action_seq, action_dim, dtype=jnp.float32)
    x = jnp.concatenate([state_features_seq, oh], axis=-1)  # (B, T, Din)
    B, T, _ = x.shape
    H = hidden_size
    w_ih, w_hh = params["w_ih"], params["w_hh"]
    b_ih, b_hh = params["b_ih"], params["b_hh"]

    def step(h, x_t):
        gi = x_t @ w_ih.T + b_ih
        gh = h @ w_hh.T + b_hh
        r = jax.nn.sigmoid(gi[:, :H] + gh[:, :H])
        z = jax.nn.sigmoid(gi[:, H:2 * H] + gh[:, H:2 * H])
        n = jnp.tanh(gi[:, 2 * H:] + r * gh[:, 2 * H:])
        h_new = (1.0 - z) * n + z * h
        return h_new, None

    h0 = jnp.zeros((B, H), jnp.float32)
    h_last, _ = lax.scan(step, h0, jnp.transpose(x, (1, 0, 2)))
    return (h_last @ params["w_fc"].T + params["b_fc"])[:, 0]


def init_params(key, feature_size, action_dim, hidden_size):
    Din = feature_size + action_dim
    H = hidden_size
    ks = jax.random.split(key, 6)
    scale = 1.0 / jnp.sqrt(H)
    u = lambda k, shp: jax.random.uniform(k, shp, jnp.float32, -scale, scale)
    return {
        "w_ih": u(ks[0], (3 * H, Din)),
        "w_hh": u(ks[1], (3 * H, H)),
        "b_ih": u(ks[2], (3 * H,)),
        "b_hh": u(ks[3], (3 * H,)),
        "w_fc": u(ks[4], (1, H)),
        "b_fc": u(ks[5], (1,)),
    }


if __name__ == "__main__":
    # small shapes consistent with the module's forward
    B, T = 2, 8                 # batch, horizon (sequence length)
    feature_size = 12
    action_dim = 4              # Discrete(4)
    hidden_size = 32

    key = jax.random.PRNGKey(0)
    k_feat, k_act, k_par = jax.random.split(key, 3)

    state_features_seq = jax.random.normal(k_feat, (B, T, feature_size), jnp.float32)
    action_seq = jax.random.randint(k_act, (B, T, 1), 0, action_dim, jnp.int32)

    params = init_params(k_par, feature_size, action_dim, hidden_size)

    out = falsifier_forward(state_features_seq, action_seq, params,
                            action_dim=action_dim, hidden_size=hidden_size)
    out = jax.block_until_ready(out)

    ref = reference_forward(state_features_seq, action_seq, params,
                            action_dim=action_dim, hidden_size=hidden_size)
    assert out.shape == (B,)
    assert jnp.allclose(out, ref, atol=1e-5, rtol=1e-5), (out, ref)

    print("KERNEL_OK")
</pallas_src>

<mosaic_0001>
module attributes {stable_mosaic.version = 11 : i64} {
  func.func @_gru_fc_kernel(%arg0: memref<64x128xf32, #tpu.memory_space<vmem>>, %arg1: memref<128x384xf32, #tpu.memory_space<vmem>>, %arg2: memref<128x384xf32, #tpu.memory_space<vmem>>, %arg3: memref<1x384xf32, #tpu.memory_space<vmem>>, %arg4: memref<1x384xf32, #tpu.memory_space<vmem>>, %arg5: memref<1x128xf32, #tpu.memory_space<vmem>>, %arg6: memref<1x128xf32, #tpu.memory_space<vmem>>, %arg7: memref<8x128xf32, #tpu.memory_space<vmem>>, %arg8: memref<64x384xf32, #tpu.memory_space<vmem>>, %arg9: memref<8x128xf32, #tpu.memory_space<vmem>>) attributes {dimension_semantics = [], scalar_prefetch = 0 : i64, scratch_operands = 2 : i64, tpu.core_type = #tpu.core_type<tc>} {
    %c0 = arith.constant 0 : index
    %c0_0 = arith.constant 0 : index
    %0 = vector.load %arg0[%c0, %c0_0] : memref<64x128xf32, #tpu.memory_space<vmem>>, vector<64x128xf32>
    %c0_1 = arith.constant 0 : index
    %c0_2 = arith.constant 0 : index
    %1 = vector.load %arg1[%c0_1, %c0_2] : memref<128x384xf32, #tpu.memory_space<vmem>>, vector<128x384xf32>
    %cst = arith.constant dense<0.000000e+00> : vector<64x384xf32>
    %2 = tpu.matmul %0, %1, %cst {dimension_numbers = #tpu.dot_dimension_numbers<[1], [0], [0], [1], [0, 0, 1, 1], [], []>} : vector<64x128xf32>, vector<128x384xf32>, vector<64x384xf32> -> vector<64x384xf32>
    %c0_3 = arith.constant 0 : index
    %c0_4 = arith.constant 0 : index
    %3 = vector.load %arg3[%c0_3, %c0_4] : memref<1x384xf32, #tpu.memory_space<vmem>>, vector<1x384xf32>
    %4 = vector.broadcast %3 : vector<1x384xf32> to vector<64x384xf32>
    %5 = arith.addf %2, %4 : vector<64x384xf32>
    %c0_5 = arith.constant 0 : index
    %c0_6 = arith.constant 0 : index
    %6 = vector.load %arg8[%c0_5, %c0_6] : memref<64x384xf32, #tpu.memory_space<vmem>>, vector<64x384xf32>
    tpu.vector_store %arg8[%c0_5, %c0_6], %5 {strides = array<i32>} : memref<64x384xf32, #tpu.memory_space<vmem>>, vector<64x384xf32>,
    %cst_7 = arith.constant 0.000000e+00 : f32
    %7 = vector.broadcast %cst_7 : f32 to vector<8x128xf32>
    %c0_8 = arith.constant 0 : index
    %c0_9 = arith.constant 0 : index
    %8 = vector.load %arg9[%c0_8, %c0_9] : memref<8x128xf32, #tpu.memory_space<vmem>>, vector<8x128xf32>
    tpu.vector_store %arg9[%c0_8, %c0_9], %7 {strides = array<i32>} : memref<8x128xf32, #tpu.memory_space<vmem>>, vector<8x128xf32>,
    %c0_10 = arith.constant 0 : index
    %c0_11 = arith.constant 0 : index
    %9 = vector.load %arg2[%c0_10, %c0_11] : memref<128x384xf32, #tpu.memory_space<vmem>>, vector<128x384xf32>
    %c0_12 = arith.constant 0 : index
    %c0_13 = arith.constant 0 : index
    %10 = vector.load %arg4[%c0_12, %c0_13] : memref<1x384xf32, #tpu.memory_space<vmem>>, vector<1x384xf32>
    %c0_i32 = arith.constant 0 : i32
    %c0_14 = arith.constant 0 : index
    %c0_15 = arith.constant 0 : index
    %11 = vector.load %arg9[%c0_14, %c0_15] : memref<8x128xf32, #tpu.memory_space<vmem>>, vector<8x128xf32>
    %c8_i32 = arith.constant 8 : i32
    %12 = arith.muli %c0_i32, %c8_i32 : i32
    %13 = tpu.assume_multiple %12, 8 : i32
    %14 = arith.index_cast %13 : i32 to index
    %c0_16 = arith.constant 0 : index
    %15 = vector.load %arg8[%14, %c0_16] : memref<64x384xf32, #tpu.memory_space<vmem>>, vector<8x384xf32>
    %cst_17 = arith.constant dense<0.000000e+00> : vector<8x384xf32>
    %16 = tpu.matmul %11, %9, %cst_17 {dimension_numbers = #tpu.dot_dimension_numbers<[1], [0], [0], [1], [0, 0, 1, 1], [], []>} : vector<8x128xf32>, vector<128x384xf32>, vector<8x384xf32> -> vector<8x384xf32>
    %17 = vector.broadcast %10 : vector<1x384xf32> to vector<8x384xf32>
    %18 = arith.addf %16, %17 : vector<8x384xf32>
    %19 = vector.extract_strided_slice %15 {offsets = [0, 0], sizes = [8, 128], strides = [1, 1]} : vector<8x384xf32> to vector<8x128xf32>
    %20 = vector.extract_strided_slice %18 {offsets = [0, 0], sizes = [8, 128], strides = [1, 1]} : vector<8x384xf32> to vector<8x128xf32>
    %21 = arith.addf %19, %20 : vector<8x128xf32>
    %22 = arith.negf %21 : vector<8x128xf32>
    %23 = math.exp %22 : vector<8x128xf32>
    %cst_18 = arith.constant 1.000000e+00 : f32
    %24 = vector.broadcast %cst_18 : f32 to vector<8x128xf32>
    %25 = arith.addf %24, %23 : vector<8x128xf32>
    %26 = arith.divf %24, %25 : vector<8x128xf32>
    %27 = vector.extract_strided_slice %15 {offsets = [0, 128], sizes = [8, 128], strides = [1, 1]} : vector<8x384xf32> to vector<8x128xf32>
    %28 = vector.extract_strided_slice %18 {offsets = [0, 128], sizes = [8, 128], strides = [1, 1]} : vector<8x384xf32> to vector<8x128xf32>
    %29 = arith.addf %27, %28 : vector<8x128xf32>
    %30 = arith.negf %29 : vector<8x128xf32>
    %31 = math.exp %30 : vector<8x128xf32>
    %cst_19 = arith.constant 1.000000e+00 : f32
    %32 = vector.broadcast %cst_19 : f32 to vector<8x128xf32>
    %33 = arith.addf %32, %31 : vector<8x128xf32>
    %34 = arith.divf %32, %33 : vector<8x128xf32>
    %35 = vector.extract_strided_slice %15 {offsets = [0, 256], sizes = [8, 128], strides = [1, 1]} : vector<8x384xf32> to vector<8x128xf32>
    %36 = vector.extract_strided_slice %18 {offsets = [0, 256], sizes = [8, 128], strides = [1, 1]} : vector<8x384xf32> to vector<8x128xf32>
    %37 = arith.mulf %26, %36 : vector<8x128xf32>
    %38 = arith.addf %35, %37 : vector<8x128xf32>
    %39 = math.tanh %38 : vector<8x128xf32>
    %cst_20 = arith.constant 1.000000e+00 : f32
    %40 = vector.broadcast %cst_20 : f32 to vector<8x128xf32>
    %41 = arith.subf %40, %34 : vector<8x128xf32>
    %42 = arith.mulf %41, %39 : vector<8x128xf32>
    %43 = arith.mulf %34, %11 : vector<8x128xf32>
    %44 = arith.addf %42, %43 : vector<8x128xf32>
    %c0_21 = arith.constant 0 : index
    %c0_22 = arith.constant 0 : index
    %45 = vector.load %arg9[%c0_21, %c0_22] : memref<8x128xf32, #tpu.memory_space<vmem>>, vector<8x128xf32>
    tpu.vector_store %arg9[%c0_21, %c0_22], %44 {strides = array<i32>} : memref<8x128xf32, #tpu.memory_space<vmem>>, vector<8x128xf32>,
    %c1_i32 = arith.constant 1 : i32
    %c0_23 = arith.constant 0 : index
    %c0_24 = arith.constant 0 : index
    %46 = vector.load %arg9[%c0_23, %c0_24] : memref<8x128xf32, #tpu.memory_space<vmem>>, vector<8x128xf32>
    %c8_i32_25 = arith.constant 8 : i32
    %47 = arith.muli %c1_i32, %c8_i32_25 : i32
    %48 = tpu.assume_multiple %47, 8 : i32
    %49 = arith.index_cast %48 : i32 to index
    %c0_26 = arith.constant 0 : index
    %50 = vector.load %arg8[%49, %c0_26] : memref<64x384xf32, #tpu.memory_space<vmem>>, vector<8x384xf32>
    %cst_27 = arith.constant dense<0.000000e+00> : vector<8x384xf32>
    %51 = tpu.matmul %46, %9, %cst_27 {dimension_numbers = #tpu.dot_dimension_numbers<[1], [0], [0], [1], [0, 0, 1, 1], [], []>} : vector<8x128xf32>, vector<128x384xf32>, vector<8x384xf32> -> vector<8x384xf32>
    %52 = vector.broadcast %10 : vector<1x384xf32> to vector<8x384xf32>
    %53 = arith.addf %51, %52 : vector<8x384xf32>
    %54 = vector.extract_strided_slice %50 {offsets = [0, 0], sizes = [8, 128], strides = [1, 1]} : vector<8x384xf32> to vector<8x128xf32>
    %55 = vector.extract_strided_slice %53 {offsets = [0, 0], sizes = [8, 128], strides = [1, 1]} : vector<8x384xf32> to vector<8x128xf32>
    %56 = arith.addf %54, %55 : vector<8x128xf32>
    %57 = arith.negf %56 : vector<8x128xf32>
    %58 = math.exp %57 : vector<8x128xf32>
    %cst_28 = arith.constant 1.000000e+00 : f32
    %59 = vector.broadcast %cst_28 : f32 to vector<8x128xf32>
    %60 = arith.addf %59, %58 : vector<8x128xf32>
    %61 = arith.divf %59, %60 : vector<8x128xf32>
    %62 = vector.extract_strided_slice %50 {offsets = [0, 128], sizes = [8, 128], strides = [1, 1]} : vector<8x384xf32> to vector<8x128xf32>
    %63 = vector.extract_strided_slice %53 {offsets = [0, 128], sizes = [8, 128], strides = [1, 1]} : vector<8x384xf32> to vector<8x128xf32>
    %64 = arith.addf %62, %63 : vector<8x128xf32>
    %65 = arith.negf %64 : vector<8x128xf32>
    %66 = math.exp %65 : vector<8x128xf32>
    %cst_29 = arith.constant 1.000000e+00 : f32
    %67 = vector.broadcast %cst_29 : f32 to vector<8x128xf32>
    %68 = arith.addf %67, %66 : vector<8x128xf32>
    %69 = arith.divf %67, %68 : vector<8x128xf32>
    %70 = vector.extract_strided_slice %50 {offsets = [0, 256], sizes = [8, 128], strides = [1, 1]} : vector<8x384xf32> to vector<8x128xf32>
    %71 = vector.extract_strided_slice %53 {offsets = [0, 256], sizes = [8, 128], strides = [1, 1]} : vector<8x384xf32> to vector<8x128xf32>
    %72 = arith.mulf %61, %71 : vector<8x128xf32>
    %73 = arith.addf %70, %72 : vector<8x128xf32>
    %74 = math.tanh %73 : vector<8x128xf32>
    %cst_30 = arith.constant 1.000000e+00 : f32
    %75 = vector.broadcast %cst_30 : f32 to vector<8x128xf32>
    %76 = arith.subf %75, %69 : vector<8x128xf32>
    %77 = arith.mulf %76, %74 : vector<8x128xf32>
    %78 = arith.mulf %69, %46 : vector<8x128xf32>
    %79 = arith.addf %77, %78 : vector<8x128xf32>
    %c0_31 = arith.constant 0 : index
    %c0_32 = arith.constant 0 : index
    %80 = vector.load %arg9[%c0_31, %c0_32] : memref<8x128xf32, #tpu.memory_space<vmem>>, vector<8x128xf32>
    tpu.vector_store %arg9[%c0_31, %c0_32], %79 {strides = array<i32>} : memref<8x128xf32, #tpu.memory_space<vmem>>, vector<8x128xf32>,
    %c2_i32 = arith.constant 2 : i32
    %c0_33 = arith.constant 0 : index
    %c0_34 = arith.constant 0 : index
    %81 = vector.load %arg9[%c0_33, %c0_34] : memref<8x128xf32, #tpu.memory_space<vmem>>, vector<8x128xf32>
    %c8_i32_35 = arith.constant 8 : i32
    %82 = arith.muli %c2_i32, %c8_i32_35 : i32
    %83 = tpu.assume_multiple %82, 8 : i32
    %84 = arith.index_cast %83 : i32 to index
    %c0_36 = arith.constant 0 : index
    %85 = vector.load %arg8[%84, %c0_36] : memref<64x384xf32, #tpu.memory_space<vmem>>, vector<8x384xf32>
    %cst_37 = arith.constant dense<0.000000e+00> : vector<8x384xf32>
    %86 = tpu.matmul %81, %9, %cst_37 {dimension_numbers = #tpu.dot_dimension_numbers<[1], [0], [0], [1], [0, 0, 1, 1], [], []>} : vector<8x128xf32>, vector<128x384xf32>, vector<8x384xf32> -> vector<8x384xf32>
    %87 = vector.broadcast %10 : vector<1x384xf32> to vector<8x384xf32>
    %88 = arith.addf %86, %87 : vector<8x384xf32>
    %89 = vector.extract_strided_slice %85 {offsets = [0, 0], sizes = [8, 128], strides = [1, 1]} : vector<8x384xf32> to vector<8x128xf32>
    %90 = vector.extract_strided_slice %88 {offsets = [0, 0], sizes = [8, 128], strides = [1, 1]} : vector<8x384xf32> to vector<8x128xf32>
    %91 = arith.addf %89, %90 : vector<8x128xf32>
    %92 = arith.negf %91 : vector<8x128xf32>
    %93 = math.exp %92 : vector<8x128xf32>
    %cst_38 = arith.constant 1.000000e+00 : f32
    %94 = vector.broadcast %cst_38 : f32 to vector<8x128xf32>
    %95 = arith.addf %94, %93 : vector<8x128xf32>
    %96 = arith.divf %94, %95 : vector<8x128xf32>
    %97 = vector.extract_strided_slice %85 {offsets = [0, 128], sizes = [8, 128], strides = [1, 1]} : vector<8x384xf32> to vector<8x128xf32>
    %98 = vector.extract_strided_slice %88 {offsets = [0, 128], sizes = [8, 128], strides = [1, 1]} : vector<8x384xf32> to vector<8x128xf32>
    %99 = arith.addf %97, %98 : vector<8x128xf32>
    %100 = arith.negf %99 : vector<8x128xf32>
    %101 = math.exp %100 : vector<8x128xf32>
    %cst_39 = arith.constant 1.000000e+00 : f32
    %102 = vector.broadcast %cst_39 : f32 to vector<8x128xf32>
    %103 = arith.addf %102, %101 : vector<8x128xf32>
    %104 = arith.divf %102, %103 : vector<8x128xf32>
    %105 = vector.extract_strided_slice %85 {offsets = [0, 256], sizes = [8, 128], strides = [1, 1]} : vector<8x384xf32> to vector<8x128xf32>
    %106 = vector.extract_strided_slice %88 {offsets = [0, 256], sizes = [8, 128], strides = [1, 1]} : vector<8x384xf32> to vector<8x128xf32>
    %107 = arith.mulf %96, %106 : vector<8x128xf32>
    %108 = arith.addf %105, %107 : vector<8x128xf32>
    %109 = math.tanh %108 : vector<8x128xf32>
    %cst_40 = arith.constant 1.000000e+00 : f32
    %110 = vector.broadcast %cst_40 : f32 to vector<8x128xf32>
    %111 = arith.subf %110, %104 : vector<8x128xf32>
    %112 = arith.mulf %111, %109 : vector<8x128xf32>
    %113 = arith.mulf %104, %81 : vector<8x128xf32>
    %114 = arith.addf %112, %113 : vector<8x128xf32>
    %c0_41 = arith.constant 0 : index
    %c0_42 = arith.constant 0 : index
    %115 = vector.load %arg9[%c0_41, %c0_42] : memref<8x128xf32, #tpu.memory_space<vmem>>, vector<8x128xf32>
    tpu.vector_store %arg9[%c0_41, %c0_42], %114 {strides = array<i32>} : memref<8x128xf32, #tpu.memory_space<vmem>>, vector<8x128xf32>,
    %c3_i32 = arith.constant 3 : i32
    %c0_43 = arith.constant 0 : index
    %c0_44 = arith.constant 0 : index
    %116 = vector.load %arg9[%c0_43, %c0_44] : memref<8x128xf32, #tpu.memory_space<vmem>>, vector<8x128xf32>
    %c8_i32_45 = arith.constant 8 : i32
    %117 = arith.muli %c3_i32, %c8_i32_45 : i32
    %118 = tpu.assume_multiple %117, 8 : i32
    %119 = arith.index_cast %118 : i32 to index
    %c0_46 = arith.constant 0 : index
    %120 = vector.load %arg8[%119, %c0_46] : memref<64x384xf32, #tpu.memory_space<vmem>>, vector<8x384xf32>
    %cst_47 = arith.constant dense<0.000000e+00> : vector<8x384xf32>
    %121 = tpu.matmul %116, %9, %cst_47 {dimension_numbers = #tpu.dot_dimension_numbers<[1], [0], [0], [1], [0, 0, 1, 1], [], []>} : vector<8x128xf32>, vector<128x384xf32>, vector<8x384xf32> -> vector<8x384xf32>
    %122 = vector.broadcast %10 : vector<1x384xf32> to vector<8x384xf32>
    %123 = arith.addf %121, %122 : vector<8x384xf32>
    %124 = vector.extract_strided_slice %120 {offsets = [0, 0], sizes = [8, 128], strides = [1, 1]} : vector<8x384xf32> to vector<8x128xf32>
    %125 = vector.extract_strided_slice %123 {offsets = [0, 0], sizes = [8, 128], strides = [1, 1]} : vector<8x384xf32> to vector<8x128xf32>
    %126 = arith.addf %124, %125 : vector<8x128xf32>
    %127 = arith.negf %126 : vector<8x128xf32>
    %128 = math.exp %127 : vector<8x128xf32>
    %cst_48 = arith.constant 1.000000e+00 : f32
    %129 = vector.broadcast %cst_48 : f32 to vector<8x128xf32>
    %130 = arith.addf %129, %128 : vector<8x128xf32>
    %131 = arith.divf %129, %130 : vector<8x128xf32>
    %132 = vector.extract_strided_slice %120 {offsets = [0, 128], sizes = [8, 128], strides = [1, 1]} : vector<8x384xf32> to vector<8x128xf32>
    %133 = vector.extract_strided_slice %123 {offsets = [0, 128], sizes = [8, 128], strides = [1, 1]} : vector<8x384xf32> to vector<8x128xf32>
    %134 = arith.addf %132, %133 : vector<8x128xf32>
    %135 = arith.negf %134 : vector<8x128xf32>
    %136 = math.exp %135 : vector<8x128xf32>
    %cst_49 = arith.constant 1.000000e+00 : f32
    %137 = vector.broadcast %cst_49 : f32 to vector<8x128xf32>
    %138 = arith.addf %137, %136 : vector<8x128xf32>
    %139 = arith.divf %137, %138 : vector<8x128xf32>
    %140 = vector.extract_strided_slice %120 {offsets = [0, 256], sizes = [8, 128], strides = [1, 1]} : vector<8x384xf32> to vector<8x128xf32>
    %141 = vector.extract_strided_slice %123 {offsets = [0, 256], sizes = [8, 128], strides = [1, 1]} : vector<8x384xf32> to vector<8x128xf32>
    %142 = arith.mulf %131, %141 : vector<8x128xf32>
    %143 = arith.addf %140, %142 : vector<8x128xf32>
    %144 = math.tanh %143 : vector<8x128xf32>
    %cst_50 = arith.constant 1.000000e+00 : f32
    %145 = vector.broadcast %cst_50 : f32 to vector<8x128xf32>
    %146 = arith.subf %145, %139 : vector<8x128xf32>
    %147 = arith.mulf %146, %144 : vector<8x128xf32>
    %148 = arith.mulf %139, %116 : vector<8x128xf32>
    %149 = arith.addf %147, %148 : vector<8x128xf32>
    %c0_51 = arith.constant 0 : index
    %c0_52 = arith.constant 0 : index
    %150 = vector.load %arg9[%c0_51, %c0_52] : memref<8x128xf32, #tpu.memory_space<vmem>>, vector<8x128xf32>
    tpu.vector_store %arg9[%c0_51, %c0_52], %149 {strides = array<i32>} : memref<8x128xf32, #tpu.memory_space<vmem>>, vector<8x128xf32>,
    %c4_i32 = arith.constant 4 : i32
    %c0_53 = arith.constant 0 : index
    %c0_54 = arith.constant 0 : index
    %151 = vector.load %arg9[%c0_53, %c0_54] : memref<8x128xf32, #tpu.memory_space<vmem>>, vector<8x128xf32>
    %c8_i32_55 = arith.constant 8 : i32
    %152 = arith.muli %c4_i32, %c8_i32_55 : i32
    %153 = tpu.assume_multiple %152, 8 : i32
    %154 = arith.index_cast %153 : i32 to index
    %c0_56 = arith.constant 0 : index
    %155 = vector.load %arg8[%154, %c0_56] : memref<64x384xf32, #tpu.memory_space<vmem>>, vector<8x384xf32>
    %cst_57 = arith.constant dense<0.000000e+00> : vector<8x384xf32>
    %156 = tpu.matmul %151, %9, %cst_57 {dimension_numbers = #tpu.dot_dimension_numbers<[1], [0], [0], [1], [0, 0, 1, 1], [], []>} : vector<8x128xf32>, vector<128x384xf32>, vector<8x384xf32> -> vector<8x384xf32>
    %157 = vector.broadcast %10 : vector<1x384xf32> to vector<8x384xf32>
    %158 = arith.addf %156, %157 : vector<8x384xf32>
    %159 = vector.extract_strided_slice %155 {offsets = [0, 0], sizes = [8, 128], strides = [1, 1]} : vector<8x384xf32> to vector<8x128xf32>
    %160 = vector.extract_strided_slice %158 {offsets = [0, 0], sizes = [8, 128], strides = [1, 1]} : vector<8x384xf32> to vector<8x128xf32>
    %161 = arith.addf %159, %160 : vector<8x128xf32>
    %162 = arith.negf %161 : vector<8x128xf32>
    %163 = math.exp %162 : vector<8x128xf32>
    %cst_58 = arith.constant 1.000000e+00 : f32
    %164 = vector.broadcast %cst_58 : f32 to vector<8x128xf32>
    %165 = arith.addf %164, %163 : vector<8x128xf32>
    %166 = arith.divf %164, %165 : vector<8x128xf32>
    %167 = vector.extract_strided_slice %155 {offsets = [0, 128], sizes = [8, 128], strides = [1, 1]} : vector<8x384xf32> to vector<8x128xf32>
    %168 = vector.extract_strided_slice %158 {offsets = [0, 128], sizes = [8, 128], strides = [1, 1]} : vector<8x384xf32> to vector<8x128xf32>
    %169 = arith.addf %167, %168 : vector<8x128xf32>
    %170 = arith.negf %169 : vector<8x128xf32>
    %171 = math.exp %170 : vector<8x128xf32>
    %cst_59 = arith.constant 1.000000e+00 : f32
    %172 = vector.broadcast %cst_59 : f32 to vector<8x128xf32>
    %173 = arith.addf %172, %171 : vector<8x128xf32>
    %174 = arith.divf %172, %173 : vector<8x128xf32>
    %175 = vector.extract_strided_slice %155 {offsets = [0, 256], sizes = [8, 128], strides = [1, 1]} : vector<8x384xf32> to vector<8x128xf32>
    %176 = vector.extract_strided_slice %158 {offsets = [0, 256], sizes = [8, 128], strides = [1, 1]} : vector<8x384xf32> to vector<8x128xf32>
    %177 = arith.mulf %166, %176 : vector<8x128xf32>
    %178 = arith.addf %175, %177 : vector<8x128xf32>
    %179 = math.tanh %178 : vector<8x128xf32>
    %cst_60 = arith.constant 1.000000e+00 : f32
    %180 = vector.broadcast %cst_60 : f32 to vector<8x128xf32>
    %181 = arith.subf %180, %174 : vector<8x128xf32>
    %182 = arith.mulf %181, %179 : vector<8x128xf32>
    %183 = arith.mulf %174, %151 : vector<8x128xf32>
    %184 = arith.addf %182, %183 : vector<8x128xf32>
    %c0_61 = arith.constant 0 : index
    %c0_62 = arith.constant 0 : index
    %185 = vector.load %arg9[%c0_61, %c0_62] : memref<8x128xf32, #tpu.memory_space<vmem>>, vector<8x128xf32>
    tpu.vector_store %arg9[%c0_61, %c0_62], %184 {strides = array<i32>} : memref<8x128xf32, #tpu.memory_space<vmem>>, vector<8x128xf32>,
    %c5_i32 = arith.constant 5 : i32
    %c0_63 = arith.constant 0 : index
    %c0_64 = arith.constant 0 : index
    %186 = vector.load %arg9[%c0_63, %c0_64] : memref<8x128xf32, #tpu.memory_space<vmem>>, vector<8x128xf32>
    %c8_i32_65 = arith.constant 8 : i32
    %187 = arith.muli %c5_i32, %c8_i32_65 : i32
    %188 = tpu.assume_multiple %187, 8 : i32
    %189 = arith.index_cast %188 : i32 to index
    %c0_66 = arith.constant 0 : index
    %190 = vector.load %arg8[%189, %c0_66] : memref<64x384xf32, #tpu.memory_space<vmem>>, vector<8x384xf32>
    %cst_67 = arith.constant dense<0.000000e+00> : vector<8x384xf32>
    %191 = tpu.matmul %186, %9, %cst_67 {dimension_numbers = #tpu.dot_dimension_numbers<[1], [0], [0], [1], [0, 0, 1, 1], [], []>} : vector<8x128xf32>, vector<128x384xf32>, vector<8x384xf32> -> vector<8x384xf32>
    %192 = vector.broadcast %10 : vector<1x384xf32> to vector<8x384xf32>
    %193 = arith.addf %191, %192 : vector<8x384xf32>
    %194 = vector.extract_strided_slice %190 {offsets = [0, 0], sizes = [8, 128], strides = [1, 1]} : vector<8x384xf32> to vector<8x128xf32>
    %195 = vector.extract_strided_slice %193 {offsets = [0, 0], sizes = [8, 128], strides = [1, 1]} : vector<8x384xf32> to vector<8x128xf32>
    %196 = arith.addf %194, %195 : vector<8x128xf32>
    %197 = arith.negf %196 : vector<8x128xf32>
    %198 = math.exp %197 : vector<8x128xf32>
    %cst_68 = arith.constant 1.000000e+00 : f32
    %199 = vector.broadcast %cst_68 : f32 to vector<8x128xf32>
    %200 = arith.addf %199, %198 : vector<8x128xf32>
    %201 = arith.divf %199, %200 : vector<8x128xf32>
    %202 = vector.extract_strided_slice %190 {offsets = [0, 128], sizes = [8, 128], strides = [1, 1]} : vector<8x384xf32> to vector<8x128xf32>
    %203 = vector.extract_strided_slice %193 {offsets = [0, 128], sizes = [8, 128], strides = [1, 1]} : vector<8x384xf32> to vector<8x128xf32>
    %204 = arith.addf %202, %203 : vector<8x128xf32>
    %205 = arith.negf %204 : vector<8x128xf32>
    %206 = math.exp %205 : vector<8x128xf32>
    %cst_69 = arith.constant 1.000000e+00 : f32
    %207 = vector.broadcast %cst_69 : f32 to vector<8x128xf32>
    %208 = arith.addf %207, %206 : vector<8x128xf32>
    %209 = arith.divf %207, %208 : vector<8x128xf32>
    %210 = vector.extract_strided_slice %190 {offsets = [0, 256], sizes = [8, 128], strides = [1, 1]} : vector<8x384xf32> to vector<8x128xf32>
    %211 = vector.extract_strided_slice %193 {offsets = [0, 256], sizes = [8, 128], strides = [1, 1]} : vector<8x384xf32> to vector<8x128xf32>
    %212 = arith.mulf %201, %211 : vector<8x128xf32>
    %213 = arith.addf %210, %212 : vector<8x128xf32>
    %214 = math.tanh %213 : vector<8x128xf32>
    %cst_70 = arith.constant 1.000000e+00 : f32
    %215 = vector.broadcast %cst_70 : f32 to vector<8x128xf32>
    %216 = arith.subf %215, %209 : vector<8x128xf32>
    %217 = arith.mulf %216, %214 : vector<8x128xf32>
    %218 = arith.mulf %209, %186 : vector<8x128xf32>
    %219 = arith.addf %217, %218 : vector<8x128xf32>
    %c0_71 = arith.constant 0 : index
    %c0_72 = arith.constant 0 : index
    %220 = vector.load %arg9[%c0_71, %c0_72] : memref<8x128xf32, #tpu.memory_space<vmem>>, vector<8x128xf32>
    tpu.vector_store %arg9[%c0_71, %c0_72], %219 {strides = array<i32>} : memref<8x128xf32, #tpu.memory_space<vmem>>, vector<8x128xf32>,
    %c6_i32 = arith.constant 6 : i32
    %c0_73 = arith.constant 0 : index
    %c0_74 = arith.constant 0 : index
    %221 = vector.load %arg9[%c0_73, %c0_74] : memref<8x128xf32, #tpu.memory_space<vmem>>, vector<8x128xf32>
    %c8_i32_75 = arith.constant 8 : i32
    %222 = arith.muli %c6_i32, %c8_i32_75 : i32
    %223 = tpu.assume_multiple %222, 8 : i32
    %224 = arith.index_cast %223 : i32 to index
    %c0_76 = arith.constant 0 : index
    %225 = vector.load %arg8[%224, %c0_76] : memref<64x384xf32, #tpu.memory_space<vmem>>, vector<8x384xf32>
    %cst_77 = arith.constant dense<0.000000e+00> : vector<8x384xf32>
    %226 = tpu.matmul %221, %9, %cst_77 {dimension_numbers = #tpu.dot_dimension_numbers<[1], [0], [0], [1], [0, 0, 1, 1], [], []>} : vector<8x128xf32>, vector<128x384xf32>, vector<8x384xf32> -> vector<8x384xf32>
    %227 = vector.broadcast %10 : vector<1x384xf32> to vector<8x384xf32>
    %228 = arith.addf %226, %227 : vector<8x384xf32>
    %229 = vector.extract_strided_slice %225 {offsets = [0, 0], sizes = [8, 128], strides = [1, 1]} : vector<8x384xf32> to vector<8x128xf32>
    %230 = vector.extract_strided_slice %228 {offsets = [0, 0], sizes = [8, 128], strides = [1, 1]} : vector<8x384xf32> to vector<8x128xf32>
    %231 = arith.addf %229, %230 : vector<8x128xf32>
    %232 = arith.negf %231 : vector<8x128xf32>
    %233 = math.exp %232 : vector<8x128xf32>
    %cst_78 = arith.constant 1.000000e+00 : f32
    %234 = vector.broadcast %cst_78 : f32 to vector<8x128xf32>
    %235 = arith.addf %234, %233 : vector<8x128xf32>
    %236 = arith.divf %234, %235 : vector<8x128xf32>
    %237 = vector.extract_strided_slice %225 {offsets = [0, 128], sizes = [8, 128], strides = [1, 1]} : vector<8x384xf32> to vector<8x128xf32>
    %238 = vector.extract_strided_slice %228 {offsets = [0, 128], sizes = [8, 128], strides = [1, 1]} : vector<8x384xf32> to vector<8x128xf32>
    %239 = arith.addf %237, %238 : vector<8x128xf32>
    %240 = arith.negf %239 : vector<8x128xf32>
    %241 = math.exp %240 : vector<8x128xf32>
    %cst_79 = arith.constant 1.000000e+00 : f32
    %242 = vector.broadcast %cst_79 : f32 to vector<8x128xf32>
    %243 = arith.addf %242, %241 : vector<8x128xf32>
    %244 = arith.divf %242, %243 : vector<8x128xf32>
    %245 = vector.extract_strided_slice %225 {offsets = [0, 256], sizes = [8, 128], strides = [1, 1]} : vector<8x384xf32> to vector<8x128xf32>
    %246 = vector.extract_strided_slice %228 {offsets = [0, 256], sizes = [8, 128], strides = [1, 1]} : vector<8x384xf32> to vector<8x128xf32>
    %247 = arith.mulf %236, %246 : vector<8x128xf32>
    %248 = arith.addf %245, %247 : vector<8x128xf32>
    %249 = math.tanh %248 : vector<8x128xf32>
    %cst_80 = arith.constant 1.000000e+00 : f32
    %250 = vector.broadcast %cst_80 : f32 to vector<8x128xf32>
    %251 = arith.subf %250, %244 : vector<8x128xf32>
    %252 = arith.mulf %251, %249 : vector<8x128xf32>
    %253 = arith.mulf %244, %221 : vector<8x128xf32>
    %254 = arith.addf %252, %253 : vector<8x128xf32>
    %c0_81 = arith.constant 0 : index
    %c0_82 = arith.constant 0 : index
    %255 = vector.load %arg9[%c0_81, %c0_82] : memref<8x128xf32, #tpu.memory_space<vmem>>, vector<8x128xf32>
    tpu.vector_store %arg9[%c0_81, %c0_82], %254 {strides = array<i32>} : memref<8x128xf32, #tpu.memory_space<vmem>>, vector<8x128xf32>,
    %c7_i32 = arith.constant 7 : i32
    %c0_83 = arith.constant 0 : index
    %c0_84 = arith.constant 0 : index
    %256 = vector.load %arg9[%c0_83, %c0_84] : memref<8x128xf32, #tpu.memory_space<vmem>>, vector<8x128xf32>
    %c8_i32_85 = arith.constant 8 : i32
    %257 = arith.muli %c7_i32, %c8_i32_85 : i32
    %258 = tpu.assume_multiple %257, 8 : i32
    %259 = arith.index_cast %258 : i32 to index
    %c0_86 = arith.constant 0 : index
    %260 = vector.load %arg8[%259, %c0_86] : memref<64x384xf32, #tpu.memory_space<vmem>>, vector<8x384xf32>
    %cst_87 = arith.constant dense<0.000000e+00> : vector<8x384xf32>
    %261 = tpu.matmul %256, %9, %cst_87 {dimension_numbers = #tpu.dot_dimension_numbers<[1], [0], [0], [1], [0, 0, 1, 1], [], []>} : vector<8x128xf32>, vector<128x384xf32>, vector<8x384xf32> -> vector<8x384xf32>
    %262 = vector.broadcast %10 : vector<1x384xf32> to vector<8x384xf32>
    %263 = arith.addf %261, %262 : vector<8x384xf32>
    %264 = vector.extract_strided_slice %260 {offsets = [0, 0], sizes = [8, 128], strides = [1, 1]} : vector<8x384xf32> to vector<8x128xf32>
    %265 = vector.extract_strided_slice %263 {offsets = [0, 0], sizes = [8, 128], strides = [1, 1]} : vector<8x384xf32> to vector<8x128xf32>
    %266 = arith.addf %264, %265 : vector<8x128xf32>
    %267 = arith.negf %266 : vector<8x128xf32>
    %268 = math.exp %267 : vector<8x128xf32>
    %cst_88 = arith.constant 1.000000e+00 : f32
    %269 = vector.broadcast %cst_88 : f32 to vector<8x128xf32>
    %270 = arith.addf %269, %268 : vector<8x128xf32>
    %271 = arith.divf %269, %270 : vector<8x128xf32>
    %272 = vector.extract_strided_slice %260 {offsets = [0, 128], sizes = [8, 128], strides = [1, 1]} : vector<8x384xf32> to vector<8x128xf32>
    %273 = vector.extract_strided_slice %263 {offsets = [0, 128], sizes = [8, 128], strides = [1, 1]} : vector<8x384xf32> to vector<8x128xf32>
    %274 = arith.addf %272, %273 : vector<8x128xf32>
    %275 = arith.negf %274 : vector<8x128xf32>
    %276 = math.exp %275 : vector<8x128xf32>
    %cst_89 = arith.constant 1.000000e+00 : f32
    %277 = vector.broadcast %cst_89 : f32 to vector<8x128xf32>
    %278 = arith.addf %277, %276 : vector<8x128xf32>
    %279 = arith.divf %277, %278 : vector<8x128xf32>
    %280 = vector.extract_strided_slice %260 {offsets = [0, 256], sizes = [8, 128], strides = [1, 1]} : vector<8x384xf32> to vector<8x128xf32>
    %281 = vector.extract_strided_slice %263 {offsets = [0, 256], sizes = [8, 128], strides = [1, 1]} : vector<8x384xf32> to vector<8x128xf32>
    %282 = arith.mulf %271, %281 : vector<8x128xf32>
    %283 = arith.addf %280, %282 : vector<8x128xf32>
    %284 = math.tanh %283 : vector<8x128xf32>
    %cst_90 = arith.constant 1.000000e+00 : f32
    %285 = vector.broadcast %cst_90 : f32 to vector<8x128xf32>
    %286 = arith.subf %285, %279 : vector<8x128xf32>
    %287 = arith.mulf %286, %284 : vector<8x128xf32>
    %288 = arith.mulf %279, %256 : vector<8x128xf32>
    %289 = arith.addf %287, %288 : vector<8x128xf32>
    %c0_91 = arith.constant 0 : index
    %c0_92 = arith.constant 0 : index
    %290 = vector.load %arg9[%c0_91, %c0_92] : memref<8x128xf32, #tpu.memory_space<vmem>>, vector<8x128xf32>
    tpu.vector_store %arg9[%c0_91, %c0_92], %289 {strides = array<i32>} : memref<8x128xf32, #tpu.memory_space<vmem>>, vector<8x128xf32>,
    %c8_i32_93 = arith.constant 8 : i32
    %c0_94 = arith.constant 0 : index
    %c0_95 = arith.constant 0 : index
    %291 = vector.load %arg9[%c0_94, %c0_95] : memref<8x128xf32, #tpu.memory_space<vmem>>, vector<8x128xf32>
    %c0_96 = arith.constant 0 : index
    %c0_97 = arith.constant 0 : index
    %292 = vector.load %arg5[%c0_96, %c0_97] : memref<1x128xf32, #tpu.memory_space<vmem>>, vector<1x128xf32>
    %293 = vector.broadcast %292 : vector<1x128xf32> to vector<8x128xf32>
    %294 = arith.mulf %291, %293 : vector<8x128xf32>
    %cst_98 = arith.constant dense<0.000000e+00> : vector<8xf32>
    %295 = vector.multi_reduction <add>, %294, %cst_98 [1] : vector<8x128xf32> to vector<8xf32>
    %296 = vector.shape_cast %295 : vector<8xf32> to vector<8x1xf32>
    %c0_99 = arith.constant 0 : index
    %c0_100 = arith.constant 0 : index
    %297 = vector.load %arg6[%c0_99, %c0_100] : memref<1x128xf32, #tpu.memory_space<vmem>>, vector<1x128xf32>
    %298 = vector.broadcast %296 : vector<8x1xf32> to vector<8x128xf32>
    %299 = vector.broadcast %297 : vector<1x128xf32> to vector<8x128xf32>
    %300 = arith.addf %298, %299 : vector<8x128xf32>
    %c0_101 = arith.constant 0 : index
    %c0_102 = arith.constant 0 : index
    %301 = vector.load %arg7[%c0_101, %c0_102] : memref<8x128xf32, #tpu.memory_space<vmem>>, vector<8x128xf32>
    tpu.vector_store %arg7[%c0_101, %c0_102], %300 {strides = array<i32>} : memref<8x128xf32, #tpu.memory_space<vmem>>, vector<8x128xf32>,
    return
  }
}

</mosaic_0001>

<bundles_post_ra>
// kernel: tpu_custom_call.1
= control target key start
LH: loop header
LB: loop body
LE: loop exit
PB: predicated region body
PF: predicated region fallthrough
CT: control target
= control target key end

     0   :  { %12 = vsyncpa [#allocation5], 0  ;;  %s3609_s0 = inlined_call_operand.hbm [shape: f32[64,128], index: 0, kind: input, shape index: {}]   ;;  %s3610_s1 = inlined_call_operand.hbm [shape: f32[128,384], index: 1, kind: input, shape index: {}]   ;;  %s3611_s2 = inlined_call_operand.hbm [shape: f32[128,384], index: 2, kind: input, shape index: {}]   ;;  %s3612_s3 = inlined_call_operand.vmem [shape: f32[1,384], index: 3, kind: input, shape index: {}]   ;;  %s3613_s4 = inlined_call_operand.vmem [shape: f32[1,384], index: 4, kind: input, shape index: {}]   ;;  %s3614_s5 = inlined_call_operand.vmem [shape: f32[1,128], index: 5, kind: input, shape index: {}]   ;;  %s3615_s6 = inlined_call_operand.vmem [shape: f32[1,128], index: 6, kind: input, shape index: {}]   ;;  %s3616_s7 = inlined_call_operand.hbm [shape: f32[8,128], index: 7, kind: output, shape index: {}]  }
   0x1   :  { %13 = vsyncpa [#allocation8], 0 }
   0x2   :  { %14 = vsyncpa [#allocation6], 0  ;;  %s3099_s24 = smov [#allocation7]   ;;  %s3005_s28 = scalar_lea.hbm %s3610_s1, 6144 }
   0x3   :  { %s32_s25 = sshll.u32 %s3099_s24, 4  ;;  %p3006_p0 = scmp.ne.s32.totalorder %s3610_s1, %s3005_s28  ;;  %s33_s25 = int_to_ptr.vmem [resolvable:$true] %s32_s25 }
   0x4   :  { %p3009_p1 = scmp.lt.u32.totalorder %s3005_s28, %s3610_s1 }
   0x6   :  { %p3011_p2 = pnand %p3009_p1, %p3006_p0 }
   0x8   :  { %3014 = shalt.err (!%p3011_p2)
}
   0x9   :  { %s3015_s10 = scalar_lea.vmem %s33_s25, 6144  ;;  %p3020_p4 = scmp.lt.s32.totalorder %s33_s25, %s33_s25 }
   0xa   :  { %p3016_p3 = scmp.ne.s32.totalorder %s33_s25, %s3015_s10  ;;  %p3021_p5 = scmp.lt.s32.totalorder %s3015_s10, %s3015_s10 }
   0xc   :  { %p3022_p6 = por %p3021_p5, %p3020_p4 }
   0xe   :  { %p3023_p7 = pnand %p3022_p6, %p3016_p3 }
  0x10   :  { %3026 = shalt.err (!%p3023_p7)
}
  0x11   :  { %s3100_s11 = smov 384   ;;  %s3101_s12 = smov 24  }
  0x12   :  { %38 = dma.hbm_to_vmem [thread:$0]  %s3610_s1, 6144, %s33_s25, [#allocation8], %s3100_s11, %s3100_s11, %s3101_s12  }
  0x13   :  { %s3102_s15 = smov [#allocation4]   ;;  %s3027_s19 = scalar_lea.hbm %s3609_s0, 1024 }
  0x14   :  { %s20_s16 = sshll.u32 %s3102_s15, 4  ;;  %p3028_p8 = scmp.ne.s32.totalorder %s3609_s0, %s3027_s19  ;;  %s21_s16 = int_to_ptr.vmem [resolvable:$true] %s20_s16 }
  0x15   :  { %p3031_p9 = scmp.lt.u32.totalorder %s3027_s19, %s3609_s0 }
  0x17   :  { %p3033_p10 = pnand %p3031_p9, %p3028_p8 }
  0x19   :  { %3036 = shalt.err (!%p3033_p10)
}
  0x1a   :  { %s3037_s24 = scalar_lea.vmem %s21_s16, 1024  ;;  %p3042_p12 = scmp.lt.s32.totalorder %s21_s16, %s21_s16 }
  0x1b   :  { %p3038_p11 = scmp.ne.s32.totalorder %s21_s16, %s3037_s24  ;;  %p3043_p13 = scmp.lt.s32.totalorder %s3037_s24, %s3037_s24 }
  0x1d   :  { %p3044_p0 = por %p3043_p13, %p3042_p12 }
  0x1f   :  { %p3045_p1 = pnand %p3044_p0, %p3038_p11 }
  0x21   :  { %3048 = shalt.err (!%p3045_p1)
}
  0x22   :  { %s3103_s1 = smov 128   ;;  %s3104_s25 = smov 8  }
  0x23   :  { %26 = dma.hbm_to_vmem [thread:$0]  %s3609_s0, 1024, %s21_s16, [#allocation5], %s3103_s1, %s3103_s1, %s3104_s25  }
  0x24   :  { %s3105_s28 = smov [#allocation9]   ;;  %s3049_s9 = scalar_lea.hbm %s3611_s2, 6144 }
  0x25   :  { %s44_s29 = sshll.u32 %s3105_s28, 4  ;;  %p3050_p2 = scmp.ne.s32.totalorder %s3611_s2, %s3049_s9  ;;  %s45_s29 = int_to_ptr.vmem [resolvable:$true] %s44_s29 }
  0x26   :  { %p3053_p3 = scmp.lt.u32.totalorder %s3049_s9, %s3611_s2 }
  0x28   :  { %p3055_p4 = pnand %p3053_p3, %p3050_p2 }
  0x2a   :  { %3058 = shalt.err (!%p3055_p4)
}
  0x2b   :  { %s3059_s17 = scalar_lea.vmem %s45_s29, 6144  ;;  %p3064_p6 = scmp.lt.s32.totalorder %s45_s29, %s45_s29 }
  0x2c   :  { %p3060_p5 = scmp.ne.s32.totalorder %s45_s29, %s3059_s17  ;;  %p3065_p7 = scmp.lt.s32.totalorder %s3059_s17, %s3059_s17 }
  0x2e   :  { %p3066_p8 = por %p3065_p7, %p3064_p6 }
  0x30   :  { %p3067_p9 = pnand %p3066_p8, %p3060_p5 }
  0x32   :  { %3070 = shalt.err (!%p3067_p9)
}
  0x33   :  { %50 = dma.hbm_to_vmem [thread:$0]  %s3611_s2, 6144, %s45_s29, [#allocation8], %s3100_s11, %s3100_s11, %s3101_s12  }
  0x34   :  { %3093 = dma.done.wait [#allocation5], 1024  }
  0x35   :  { %3094 = vsyncadd [#allocation5], 4294966272 }
  0x36   :  { %3095 = dma.done.wait [#allocation8], 12288  }
  0x37   :  { %3096 = vsyncadd [#allocation8], 4294955008  ;;  %v3106_v0 = vmov 0.0   ;;  %v77_v1 = vld [vmem:[#allocation7 + $0x8] sm:$0xff]  ;;  %v80_v2 = vld [vmem:[#allocation7 + $0x20] sm:$0xff]  ;;  %vm3108_vm0 = vmmov 0  }
  0x38   :  { %205 = vmatprep.mubr.f32.mxu0 %v3106_v0  ;;  %v76_v3 = vld [vmem:[#allocation7] sm:$0xff]  ;;  %v2354_v4 = vpack.c.bf16 %v80_v2, %v77_v1  ;;  %v79_v5 = vld [vmem:[#allocation7 + $0x18] sm:$0xff]  ;;  %v86_v7 = vld [vmem:[#allocation7 + $0x50] sm:$0xff]  ;;  %s3109_s21 = smov [#allocation10]  }
  0x39   :  { %v83_v6 = vld [vmem:[#allocation7 + $0x38] sm:$0xff]  ;;  %v2356_v8 = vpack.c.bf16 %v79_v5, %v76_v3  ;;  %v82_v10 = vld [vmem:[#allocation7 + $0x30] sm:$0xff]  ;;  %v85_v11 = vld [vmem:[#allocation7 + $0x48] sm:$0xff]  ;;  %s1835_s22 = sshll.u32 %s3109_s21, 4  ;;  %s1836_s22 = int_to_ptr.vmem [resolvable:$true] %s1835_s22 }
  0x3a   :  { %v2358_v9 = vpack.c.bf16 %v86_v7, %v83_v6  ;;  %v89_v12 = vld [vmem:[#allocation7 + $0x68] sm:$0xff]  ;;  %2355 = vmatprep.subr.bf16.mxu0 %v2354_v4  ;;  %v92_v13 = vld [vmem:[#allocation7 + $0x80] sm:$0xff]  ;;  %v2360_v14 = vpack.c.bf16 %v85_v11, %v82_v10  ;;  %v91_v17 = vld [vmem:[#allocation7 + $0x78] sm:$0xff]  ;;  %s3071_s23 = scalar_lea.vmem %s1836_s22, 128  ;;  %p3076_p11 = scmp.lt.s32.totalorder %s1836_s22, %s1836_s22 }
  0x3b   :  { %2357 = vmatpush1.bf16.msra.mxu0 %v2356_v8  ;;  %v2362_v15 = vpack.c.bf16 %v92_v13, %v89_v12  ;;  %v88_v16 = vld [vmem:[#allocation7 + $0x60] sm:$0xff]  ;;  %v95_v18 = vld [vmem:[#allocation7 + $0x98] sm:$0xff]  ;;  %v98_v19 = vld [vmem:[#allocation7 + $0xb0] sm:$0xff]  ;;  %p3072_p10 = scmp.ne.s32.totalorder %s1836_s22, %s3071_s23  ;;  %p3077_p12 = scmp.lt.s32.totalorder %s3071_s23, %s3071_s23 }
  0x3c   :  { %2359 = vmatprep.subr.bf16.mxu0 %v2358_v9  ;;  %v2364_v20 = vpack.c.bf16 %v91_v17, %v88_v16  ;;  %v94_v21 = vld [vmem:[#allocation7 + $0x90] sm:$0xff]  ;;  %v2366_v22 = vpack.c.bf16 %v98_v19, %v95_v18  ;;  %v97_v23 = vld [vmem:[#allocation7 + $0xa8] sm:$0xff]  ;;  %v104_v27 = vld [vmem:[#allocation7 + $0xe0] sm:$0xff] }
  0x3d   :  { %v78_v24 = vld [vmem:[#allocation7 + $0x10] sm:$0xff]  ;;  %v81_v25 = vld [vmem:[#allocation7 + $0x28] sm:$0xff]  ;;  %v84_v29 = vld [vmem:[#allocation7 + $0x40] sm:$0xff]  ;;  %v2368_v31 = vpack.c.bf16 %v97_v23, %v94_v21  ;;  %p3078_p13 = por %p3077_p12, %p3076_p11 }
  0x3e   :  { %v101_v26 = vld [vmem:[#allocation7 + $0xc8] sm:$0xff]  ;;  %v2386_v28 = vpack.c.bf16 %v81_v25, %v78_v24  ;;  %v87_v30 = vld [vmem:[#allocation7 + $0x58] sm:$0xff]  ;;  %v100_v32 = vld [vmem:[#allocation7 + $0xc0] sm:$0xff] }
  0x3f   :  { %2361 = vmatpush1.bf16.msra.mxu0 %v2360_v14  ;;  %v2390_v33 = vpack.c.bf16 %v87_v30, %v84_v29  ;;  %v2370_v34 = vpack.c.bf16 %v104_v27, %v101_v26  ;;  %v103_v35 = vld [vmem:[#allocation7 + $0xd8] sm:$0xff]  ;;  %v3193_v36 = vld [vmem:[#allocation4] sm:$0xff]  ;;  %v90_v37 = vld [vmem:[#allocation7 + $0x70] sm:$0xff]  ;;  %p3079_p0 = pnand %p3078_p13, %p3072_p10 }
  0x40   :  { %2363 = vmatprep.subr.bf16.mxu0 %v2362_v15  ;;  %2387 = vmatprep.subr.bf16.mxu1 %v2386_v28  ;;  %v107_v38 = vld [vmem:[#allocation7 + $0xf8] sm:$0xff]  ;;  %v110_v39 = vld [vmem:[#allocation7 + $0x110] sm:$0xff]  ;;  %v93_v40 = vld [vmem:[#allocation7 + $0x88] sm:$0xff]  ;;  %v2372_v42 = vpack.c.bf16 %v103_v35, %v100_v32 }
  0x41   :  { %2389 = vmatpush3.bf16.msra.mxu1 %v2386_v28  ;;  %2062 = vmatprep.mubr.f32.mxu1 %v3193_v36  ;;  %v2394_v41 = vpack.c.bf16 %v93_v40, %v90_v37  ;;  %v96_v43 = vld [vmem:[#allocation7 + $0xa0] sm:$0xff]  ;;  %v99_v44 = vld [vmem:[#allocation7 + $0xb8] sm:$0xff]  ;;  %v2374_v45 = vpack.c.bf16 %v110_v39, %v107_v38  ;;  %v106_v46 = vld [vmem:[#allocation7 + $0xf0] sm:$0xff]  ;;  %v3107_v40 = vmov 0.0|0.0  }
  0x42   :  { %2391 = vmatprep.subr.bf16.mxu1 %v2390_v33  ;;  %v109_v47 = vld [vmem:[#allocation7 + $0x108] sm:$0xff]  ;;  %v116_v49 = vld [vmem:[#allocation7 + $0x140] sm:$0xff]  ;;  %v2398_v50 = vpack.c.bf16 %v99_v44, %v96_v43  ;;  %v102_v51 = vld [vmem:[#allocation7 + $0xd0] sm:$0xff] }
  0x43   :  { %2365 = vmatpush1.bf16.msra.mxu0 %v2364_v20  ;;  %v113_v48 = vld [vmem:[#allocation7 + $0x128] sm:$0xff]  ;;  %v2376_v53 = vpack.c.bf16 %v109_v47, %v106_v46  ;;  %v112_v55 = vld [vmem:[#allocation7 + $0x120] sm:$0xff]  ;;  %v115_v56 = vld [vmem:[#allocation7 + $0x138] sm:$0xff] }
  0x44   :  { %2367 = vmatprep.subr.bf16.mxu0 %v2366_v22  ;;  %v105_v52 = vld [vmem:[#allocation7 + $0xe8] sm:$0xff]  ;;  %v2378_v54 = vpack.c.bf16 %v116_v49, %v113_v48  ;;  %v119_v57 = vld [vmem:[#allocation7 + $0x158] sm:$0xff]  ;;  %v122_v58 = vld [vmem:[#allocation7 + $0x170] sm:$0xff]  ;;  %v2380_v62 = vpack.c.bf16 %v115_v56, %v112_v55 }
  0x45   :  { %2393 = vmatpush3.bf16.msra.mxu1 %v2390_v33  ;;  %v2402_v59 = vpack.c.bf16 %v105_v52, %v102_v51  ;;  %v108_v60 = vld [vmem:[#allocation7 + $0x100] sm:$0xff]  ;;  %v111_v61 = vld [vmem:[#allocation7 + $0x118] sm:$0xff]  ;;  %v2382_v63 = vpack.c.bf16 %v122_v58, %v119_v57  ;;  %v118_v1 = vld [vmem:[#allocation7 + $0x150] sm:$0xff] }
  0x46   :  { %2395 = vmatprep.subr.bf16.mxu1 %v2394_v41  ;;  %v121_v2 = vld [vmem:[#allocation7 + $0x168] sm:$0xff]  ;;  %v388_v4 = vld [vmem:[#allocation9 + $0x20] sm:$0xff]  ;;  %v2406_v5 = vpack.c.bf16 %v111_v61, %v108_v60  ;;  %v114_v6 = vld [vmem:[#allocation7 + $0x130] sm:$0xff] }
  0x47   :  { %2369 = vmatpush1.bf16.msra.mxu0 %v2368_v31  ;;  %v385_v3 = vld [vmem:[#allocation9 + $0x8] sm:$0xff]  ;;  %v2384_v8 = vpack.c.bf16 %v121_v2, %v118_v1  ;;  %v384_v10 = vld [vmem:[#allocation9] sm:$0xff]  ;;  %v387_v11 = vld [vmem:[#allocation9 + $0x18] sm:$0xff] }
  0x48   :  { %2371 = vmatprep.subr.bf16.mxu0 %v2370_v34  ;;  %v117_v7 = vld [vmem:[#allocation7 + $0x148] sm:$0xff]  ;;  %v3196_v9 = vpack.c.bf16 %v388_v4, %v385_v3  ;;  %v391_v12 = vld [vmem:[#allocation9 + $0x38] sm:$0xff]  ;;  %v394_v13 = vld [vmem:[#allocation9 + $0x50] sm:$0xff]  ;;  %v3198_v17 = vpack.c.bf16 %v387_v11, %v384_v10 }
  0x49   :  { %2397 = vmatpush3.bf16.msra.mxu1 %v2394_v41  ;;  %v2410_v14 = vpack.c.bf16 %v117_v7, %v114_v6  ;;  %v120_v15 = vld [vmem:[#allocation7 + $0x160] sm:$0xff]  ;;  %v123_v16 = vld [vmem:[#allocation7 + $0x178] sm:$0xff]  ;;  %v3201_v18 = vpack.c.bf16 %v394_v13, %v391_v12  ;;  %v390_v19 = vld [vmem:[#allocation9 + $0x30] sm:$0xff] }
  0x4a   :  { %2399 = vmatprep.subr.bf16.mxu1 %v2398_v50  ;;  %v393_v20 = vld [vmem:[#allocation9 + $0x48] sm:$0xff]  ;;  %v400_v22 = vld [vmem:[#allocation9 + $0x80] sm:$0xff]  ;;  %v2414_v23 = vpack.c.bf16 %v123_v16, %v120_v15  ;;  %v399_v28 = vld [vmem:[#allocation9 + $0x78] sm:$0xff] }
  0x4b   :  { %2373 = vmatpush1.bf16.msra.mxu0 %v2372_v42  ;;  %v397_v21 = vld [vmem:[#allocation9 + $0x68] sm:$0xff]  ;;  %v3206_v25 = vpack.c.bf16 %v393_v20, %v390_v19  ;;  %v396_v27 = vld [vmem:[#allocation9 + $0x60] sm:$0xff]  ;;  %v403_v29 = vld [vmem:[#allocation9 + $0x98] sm:$0xff] }
  0x4c   :  { %2375 = vmatprep.subr.bf16.mxu0 %v2374_v45  ;;  %v69_v24 = vld [vmem:[#allocation4 + $0x8] sm:$0xff]  ;;  %v3209_v26 = vpack.c.bf16 %v400_v22, %v397_v21  ;;  %v406_v30 = vld [vmem:[#allocation9 + $0xb0] sm:$0xff]  ;;  %v3213_v34 = vpack.c.bf16 %v399_v28, %v396_v27  ;;  %v412_v39 = vld [vmem:[#allocation9 + $0xe0] sm:$0xff] }
  0x4d   :  { %2401 = vmatpush3.bf16.msra.mxu1 %v2398_v50  ;;  %v386_v31 = vld [vmem:[#allocation9 + $0x10] sm:$0xff]  ;;  %v389_v32 = vld [vmem:[#allocation9 + $0x28] sm:$0xff]  ;;  %v3216_v35 = vpack.c.bf16 %v406_v30, %v403_v29  ;;  %v392_v42 = vld [vmem:[#allocation9 + $0x40] sm:$0xff] }
  0x4e   :  { %2403 = vmatprep.subr.bf16.mxu1 %v2402_v59  ;;  %v70_v33 = vld [vmem:[#allocation4 + $0x10] sm:$0xff]  ;;  %v405_v37 = vld [vmem:[#allocation9 + $0xa8] sm:$0xff]  ;;  %v3219_v41 = vpack.c.bf16 %v389_v32, %v386_v31  ;;  %v395_v43 = vld [vmem:[#allocation9 + $0x58] sm:$0xff] }
  0x4f   :  { %2377 = vmatpush1.bf16.msra.mxu0 %v2376_v53  ;;  %v409_v38 = vld [vmem:[#allocation9 + $0xc8] sm:$0xff]  ;;  %v71_v44 = vld [vmem:[#allocation4 + $0x18] sm:$0xff]  ;;  %v408_v47 = vld [vmem:[#allocation9 + $0xc0] sm:$0xff]  ;;  %v3229_v51 = vpack.c.bf16 %v395_v43, %v392_v42 }
  0x50   :  { %2379 = vmatprep.subr.bf16.mxu0 %v2378_v54  ;;  %v3226_v46 = vpack.c.bf16 %v412_v39, %v409_v38  ;;  %v411_v48 = vld [vmem:[#allocation9 + $0xd8] sm:$0xff]  ;;  %v418_v50 = vld [vmem:[#allocation9 + $0x110] sm:$0xff]  ;;  %v401_v53 = vld [vmem:[#allocation9 + $0x88] sm:$0xff] }
  0x51   :  { %2405 = vmatpush3.bf16.msra.mxu1 %v2402_v59  ;;  %v415_v49 = vld [vmem:[#allocation9 + $0xf8] sm:$0xff]  ;;  %v398_v52 = vld [vmem:[#allocation9 + $0x70] sm:$0xff]  ;;  %v72_v54 = vld [vmem:[#allocation4 + $0x20] sm:$0xff]  ;;  %v3234_v55 = vpack.c.bf16 %v411_v48, %v408_v47 }
  0x52   :  { %2407 = vmatprep.subr.bf16.mxu1 %v2406_v5  ;;  %v3237_v56 = vpack.c.bf16 %v418_v50, %v415_v49  ;;  %v414_v57 = vld [vmem:[#allocation9 + $0xf0] sm:$0xff]  ;;  %v417_v58 = vld [vmem:[#allocation9 + $0x108] sm:$0xff]  ;;  %v424_v60 = vld [vmem:[#allocation9 + $0x140] sm:$0xff]  ;;  %v3240_v61 = vpack.c.bf16 %v401_v53, %v398_v52 }
  0x53   :  { %2381 = vmatpush1.bf16.msra.mxu0 %v2380_v62  ;;  %v421_v59 = vld [vmem:[#allocation9 + $0x128] sm:$0xff]  ;;  %v404_v62 = vld [vmem:[#allocation9 + $0xa0] sm:$0xff]  ;;  %v3245_v2 = vpack.c.bf16 %v417_v58, %v414_v57  ;;  %v74_v3 = vld [vmem:[#allocation4 + $0x30] sm:$0xff] }
  0x54   :  { %2383 = vmatprep.subr.bf16.mxu0 %v2382_v63  ;;  %v407_v63 = vld [vmem:[#allocation9 + $0xb8] sm:$0xff]  ;;  %v73_v1 = vld [vmem:[#allocation4 + $0x28] sm:$0xff]  ;;  %v3248_v4 = vpack.c.bf16 %v424_v60, %v421_v59  ;;  %v410_v11 = vld [vmem:[#allocation9 + $0xd0] sm:$0xff] }
  0x55   :  { %2409 = vmatpush3.bf16.msra.mxu1 %v2406_v5  ;;  %v420_v5 = vld [vmem:[#allocation9 + $0x120] sm:$0xff]  ;;  %v423_v6 = vld [vmem:[#allocation9 + $0x138] sm:$0xff]  ;;  %v3251_v10 = vpack.c.bf16 %v407_v63, %v404_v62  ;;  %v413_v12 = vld [vmem:[#allocation9 + $0xe8] sm:$0xff] }
  0x56   :  { %2411 = vmatprep.subr.bf16.mxu1 %v2410_v14  ;;  %v427_v7 = vld [vmem:[#allocation9 + $0x158] sm:$0xff]  ;;  %v3256_v13 = vpack.c.bf16 %v423_v6, %v420_v5  ;;  %v426_v16 = vld [vmem:[#allocation9 + $0x150] sm:$0xff]  ;;  %v429_v19 = vld [vmem:[#allocation9 + $0x168] sm:$0xff]  ;;  %v3262_v20 = vpack.c.bf16 %v413_v12, %v410_v11 }
  0x57   :  { %2385 = vmatpush1.bf16.msra.mxu0 %v2384_v8  ;;  %v430_v8 = vld [vmem:[#allocation9 + $0x170] sm:$0xff]  ;;  %v416_v21 = vld [vmem:[#allocation9 + $0x100] sm:$0xff]  ;;  %v419_v22 = vld [vmem:[#allocation9 + $0x118] sm:$0xff] }
  0x58   :  { %2419 = vmatprep.subr.bf16.mxu0 %v3196_v9  ;;  %v3259_v15 = vpack.c.bf16 %v430_v8, %v427_v7  ;;  %v422_v27 = vld [vmem:[#allocation9 + $0x130] sm:$0xff]  ;;  %v425_v28 = vld [vmem:[#allocation9 + $0x148] sm:$0xff]  ;;  %v428_v30 = vld [vmem:[#allocation9 + $0x160] sm:$0xff] }
  0x59   :  { %2413 = vmatpush3.bf16.msra.mxu1 %v2410_v14  ;;  %v75_v14 = vld [vmem:[#allocation4 + $0x38] sm:$0xff]  ;;  %v3280_v29 = vpack.c.bf16 %v425_v28, %v422_v27  ;;  %v124_v38 = vld [vmem:[%s3612_s3] sm:$0x7] }
  0x5a   :  { %206 = vmatmul.mubr.f32.vlgmr.msra.gmra.mrb[0].mxu0 %v3193_v36  ;;  %2415 = vmatprep.subr.bf16.mxu1 %v2414_v23  ;;  %v402_v36 = vld [vmem:[#allocation9 + $0x90] sm:$0xff]  ;;  %v431_v31 = vld [vmem:[#allocation9 + $0x178] sm:$0xff]  ;;  %v432_v59 = vld [vmem:[%s3613_s4] sm:$0x7] }
  0x5b   :  { %2421 = vmatpush1.bf16.msra.mxu0 %v3198_v17  ;;  %211 = vmatprep.mubr.f32.mxu0 %v3106_v0  ;;  %v3223_v45 = vpack.c.bf16 %v405_v37, %v402_v36  ;;  %v3288_v32 = vpack.c.bf16 %v431_v31, %v428_v30 }
  0x5c   :  { %2423 = vmatprep.subr.bf16.mxu0 %v3201_v18 }
  0x5d   :  { %2417 = vmatpush3.bf16.msra.mxu1 %v2414_v23  ;;  %v3269_v23 = vpack.c.bf16 %v429_v19, %v426_v16 }
  0x5e   :  { %212 = vmatmul.mubr.f32.gmra.mrb[2].mxu0 %v69_v24  ;;  %2450 = vmatprep.subr.bf16.mxu1 %v3107_v40 }
  0x5f   :  { %2425 = vmatpush1.bf16.msra.mxu0 %v3206_v25  ;;  %217 = vmatprep.mubr.f32.mxu0 %v3106_v0 }
  0x60   :  { %2427 = vmatprep.subr.bf16.mxu0 %v3209_v26  ;;  %2063 = vmatmul.mubr.f32.vlgmr.msra.gmra.mrb[0].mxu1 %v69_v24  ;;  %v3273_v24 = vpack.c.bf16 %v419_v22, %v416_v21 }
  0x61   :  { %2452 = vmatpush3.bf16.msra.mxu1 %v3219_v41  ;;  %2065 = vmatprep.mubr.f32.mxu1 %v70_v33 }
  0x62   :  { %218 = vmatmul.mubr.f32.gmra.mrb[4].mxu0 %v70_v33  ;;  %2453 = vmatprep.subr.bf16.mxu1 %v3107_v40  ;;  %v126_v33 = vlaneseq }
  0x63   :  { %2429 = vmatpush1.bf16.msra.mxu0 %v3213_v34  ;;  %223 = vmatprep.mubr.f32.mxu0 %v3106_v0 }
  0x64   :  { %2431 = vmatprep.subr.bf16.mxu0 %v3216_v35  ;;  %2066 = vmatmul.mubr.f32.gmra.mrb[2].mxu1 %v71_v44  ;;  %v127_v36 = vshrl.u32 %v126_v33, 7 }
  0x65   :  { %2455 = vmatpush3.bf16.msra.mxu1 %v3229_v51  ;;  %2068 = vmatprep.mubr.f32.mxu1 %v72_v54 }
  0x66   :  { %224 = vmatmul.mubr.f32.gmra.mrb[6].mxu0 %v71_v44  ;;  %2456 = vmatprep.subr.bf16.mxu1 %v3107_v40  ;;  %v136_v37 = vsub.s32 2, %v127_v36  ;;  %v128_v58 = vsub.s32 0, %v127_v36 }
  0x67   :  { %2433 = vmatpush1.bf16.msra.mxu0 %v3223_v45  ;;  %229 = vmatprep.mubr.f32.mxu0 %v3106_v0 }
  0x68   :  { %2435 = vmatprep.subr.bf16.mxu0 %v3226_v46  ;;  %2069 = vmatmul.mubr.f32.gmra.mrb[4].mxu1 %v73_v1  ;;  %v137_v39 = vrot.slane %v124_v38, %v136_v37  ;;  %v129_v5 = vrot.slane %v124_v38, %v128_v58  ;;  %v444_v6 = vrot.slane %v432_v59, %v128_v58 }
  0x69   :  { %2458 = vmatpush3.bf16.msra.mxu1 %v3240_v61  ;;  %2071 = vmatprep.mubr.f32.mxu1 %v74_v3 }
  0x6a   :  { %230 = vmatmul.mubr.f32.gmra.mrb[8].mxu0 %v72_v54  ;;  %2459 = vmatprep.subr.bf16.mxu1 %v3107_v40  ;;  %v3346_v11 = vadd.f32 %v444_v6, %v129_v5 }
  0x6b   :  { %2437 = vmatpush1.bf16.msra.mxu0 %v3234_v55  ;;  %235 = vmatprep.mubr.f32.mxu0 %v3106_v0 }
  0x6c   :  { %2439 = vmatprep.subr.bf16.mxu0 %v3237_v56  ;;  %2072 = vmatmul.mubr.f32.gmra.mrb[6].mxu1 %v75_v14 }
  0x6d   :  { %2461 = vmatpush3.bf16.msra.mxu1 %v3251_v10  ;;  %2106 = vmatprep.mubr.msk.f32.mxu1 %vm3108_vm0, %v3106_v0 }
  0x6e   :  { %236 = vmatmul.mubr.f32.gmra.mrb[10].mxu0 %v73_v1  ;;  %2462 = vmatprep.subr.bf16.mxu1 %v3107_v40  ;;  %v132_v1 = vsub.s32 1, %v127_v36  ;;  %v3352_v36 = vrot.slane %v432_v59, %v136_v37 }
  0x6f   :  { %2441 = vmatpush1.bf16.msra.mxu0 %v3245_v2  ;;  %241 = vmatprep.mubr.f32.mxu0 %v3106_v0 }
  0x70   :  { %2443 = vmatprep.subr.bf16.mxu0 %v3248_v4  ;;  %v133_v7 = vrot.slane %v124_v38, %v132_v1  ;;  %v448_v8 = vrot.slane %v432_v59, %v132_v1 }
  0x71   :  { %2464 = vmatpush3.bf16.msra.mxu1 %v3262_v20 }
  0x72   :  { %242 = vmatmul.mubr.f32.gmra.mrb[12].mxu0 %v74_v3  ;;  %2465 = vmatprep.subr.bf16.mxu1 %v3107_v40 }
  0x73   :  { %2445 = vmatpush1.bf16.msra.mxu0 %v3256_v13  ;;  %247 = vmatprep.mubr.f32.mxu0 %v3106_v0 }
  0x74   :  { %2447 = vmatprep.subr.bf16.mxu0 %v3259_v15 }
  0x75   :  { %2467 = vmatpush3.bf16.msra.mxu1 %v3273_v24 }
  0x76   :  { %248 = vmatmul.mubr.f32.gmra.mrb[14].mxu0 %v75_v14  ;;  %2468 = vmatprep.subr.bf16.mxu1 %v3107_v40  ;;  %v3348_v14 = vadd.f32 %v448_v8, %v133_v7 }
  0x77   :  { %2449 = vmatpush1.bf16.msra.mxu0 %v3269_v23  ;;  %520 = vmatprep.mubr.f32.mxu0 %v3106_v0 }
  0x78   :  { %2475 = vmatprep.subr.bf16.mxu0 %v3196_v9 }
  0x79   :  { %2470 = vmatpush3.bf16.msra.mxu1 %v3280_v29 }
  0x7a   :  { %521 = vmatmul.mubr.f32.vlgmr.msra.gmra.mrb[0].mxu0 %v3106_v0  ;;  %2471 = vmatprep.subr.bf16.mxu1 %v3107_v40 }
  0x7b   :  { %2477 = vmatpush1.bf16.msra.mxu0 %v3198_v17  ;;  %690 = vmatprep.mubr.f32.mxu0 %v3106_v0 }
  0x7c   :  { %2479 = vmatprep.subr.bf16.mxu0 %v3201_v18 }
  0x7d   :  { %2473 = vmatpush3.bf16.msra.mxu1 %v3288_v32 }
  0x7e   :  { %2506 = vmatprep.subr.bf16.mxu1 %v3107_v40 }
  0x7f   :  { %2481 = vmatpush1.bf16.msra.mxu0 %v3206_v25 }
  0x80   :  { %2483 = vmatprep.subr.bf16.mxu0 %v3209_v26  ;;  %2107 = vmatmul.mubr.f32.vlgmr.msra.gmra.mrb[8].mxu1 %v3106_v0 }
  0x81   :  { %2508 = vmatpush3.bf16.msra.mxu1 %v3219_v41  ;;  %2141 = vmatprep.mubr.msk.f32.mxu1 %vm3108_vm0, %v3106_v0 }
  0x82   :  { %2509 = vmatprep.subr.bf16.mxu1 %v3107_v40 }
  0x83   :  { %2485 = vmatpush1.bf16.msra.mxu0 %v3213_v34 }
  0x84   :  { %2487 = vmatprep.subr.bf16.mxu0 %v3216_v35 }
  0x85   :  { %2511 = vmatpush3.bf16.msra.mxu1 %v3229_v51 }
  0x86   :  { %2512 = vmatprep.subr.bf16.mxu1 %v3107_v40 }
  0x87   :  { %2489 = vmatpush1.bf16.msra.mxu0 %v3223_v45 }
  0x88   :  { %2491 = vmatprep.subr.bf16.mxu0 %v3226_v46 }
  0x89   :  { %2514 = vmatpush3.bf16.msra.mxu1 %v3240_v61 }
  0x8a   :  { %2515 = vmatprep.subr.bf16.mxu1 %v3107_v40 }
  0x8b   :  { %2493 = vmatpush1.bf16.msra.mxu0 %v3234_v55 }
  0x8c   :  { %2495 = vmatprep.subr.bf16.mxu0 %v3237_v56 }
  0x8d   :  { %2517 = vmatpush3.bf16.msra.mxu1 %v3251_v10 }
  0x8e   :  { %2518 = vmatprep.subr.bf16.mxu1 %v3107_v40 }
  0x8f   :  { %2497 = vmatpush1.bf16.msra.mxu0 %v3245_v2 }
  0x90   :  { %2499 = vmatprep.subr.bf16.mxu0 %v3248_v4 }
  0x91   :  { %2520 = vmatpush3.bf16.msra.mxu1 %v3262_v20 }
  0x92   :  { %2521 = vmatprep.subr.bf16.mxu1 %v3107_v40 }
  0x93   :  { %2501 = vmatpush1.bf16.msra.mxu0 %v3256_v13 }
  0x94   :  { %2503 = vmatprep.subr.bf16.mxu0 %v3259_v15 }
  0x95   :  { %2523 = vmatpush3.bf16.msra.mxu1 %v3273_v24 }
  0x96   :  { %2524 = vmatprep.subr.bf16.mxu1 %v3107_v40 }
  0x97   :  { %2505 = vmatpush1.bf16.msra.mxu0 %v3269_v23 }
  0x98   :  { %2531 = vmatprep.subr.bf16.mxu0 %v3196_v9 }
  0x99   :  { %2526 = vmatpush3.bf16.msra.mxu1 %v3280_v29 }
  0x9a   :  { %2527 = vmatprep.subr.bf16.mxu1 %v3107_v40 }
  0x9d   :  { %2529 = vmatpush3.bf16.msra.mxu1 %v3288_v32 }
  0x9e   :  { %2562 = vmatprep.subr.bf16.mxu1 %v3107_v40 }
 0x133   :  { %v2064_v42 = vpop.f32.mrb[0].mxu1 }
 0x134   :  { %v3329_v43 = vadd.f32 %v2064_v42, %v137_v39  ;;  %v320_v44 = vpop.f32.mrb[1].mxu1 }
 0x137   :  { %v2067_v47 = vpop.f32.mrb[2].mxu1 }
 0x138   :  { %v3331_v48 = vadd.f32 %v2067_v47, %v137_v39  ;;  %v330_v49 = vpop.f32.mrb[3].mxu1 }
 0x139   :  { %v3333_v50 = vadd.f32 %v330_v49, %v137_v39 }
 0x13b   :  { %v2070_v52 = vpop.f32.mrb[4].mxu1 }
 0x13c   :  { %v3335_v53 = vadd.f32 %v2070_v52, %v137_v39  ;;  %v340_v54 = vpop.f32.mrb[5].mxu1  ;;  %v321_v52 = vadd.f32 %v320_v44, %v137_v39 }
 0x13d   :  { %v3337_v57 = vadd.f32 %v340_v54, %v137_v39 }
 0x13f   :  { %v2073_v60 = vpop.f32.mrb[6].mxu1 }
 0x140   :  { %v3342_v62 = vadd.f32 %v2073_v60, %v137_v39  ;;  %v350_v63 = vpop.f32.mrb[7].mxu1 }
 0x141   :  { %v3344_v3 = vadd.f32 %v350_v63, %v137_v39 }
 0x14d   :  { %v522_v12 = vpop.f32.mrb[0].mxu0 }
 0x14e   :  { %v2867_v16 = vadd.f32 %v3346_v11, %v522_v12  ;;  %v524_v19 = vpop.f32.mrb[1].mxu0 }
 0x14f   :  { %v2869_v22 = vadd.f32 %v3348_v14, %v524_v19 }
 0x150   :  { %v1852_v21 = vmul.f32 -1.442695, %v2867_v16 }
 0x151   :  { %v1853_v27 = vmul.f32 -1.442695, %v2869_v22 }
 0x152   :  { %2925 = vpow2.f32 %v1852_v21 }
 0x153   :  { %v593_v28 = vpop.f32.mrb[8].mxu1  ;;  %2927 = vpow2.f32 %v1853_v27 }
 0x154   :  { %v2108_v30 = vpop.f32.mrb[9].mxu1  ;;  %v594_v47 = vadd.f32 %v593_v28, %v3352_v36 }
 0x15c   :  { %v2926_v31 = vpop.eup %2925 }
 0x15d   :  { %v601_v33 = vadd.f32 1.0, %v2926_v31  ;;  %v2928_v38 = vpop.eup %2927 }
 0x15e   :  { %v608_v42 = vadd.f32 1.0, %v2928_v38 }
 0x15f   :  { %2929 = vrcp.f32 %v601_v33 }
 0x160   :  { %2931 = vrcp.f32 %v608_v42 }
 0x169   :  { %v2930_v49 = vpop.eup %2929 }
 0x16a   :  { %v611_v54 = vmul.f32 %v2930_v49, %v594_v47  ;;  %v2932_v60 = vpop.eup %2931 }
 0x16b   :  { %v614_v63 = vsub.f32 1.0, %v2932_v60  ;;  %v616_v6 = vmul.f32 0.0, %v2932_v60 }
 0x16c   :  { %v612_v58 = vadd.f32 %v611_v54, %v321_v52 }
 0x16e   :  { %2933 = vtanh.f32 %v612_v58 }
 0x178   :  { %v2934_v1 = vpop.eup %2933 }
 0x179   :  { %v615_v5 = vmul.f32 %v2934_v1, %v614_v63 }
 0x17b   :  { %v617_v7 = vadd.f32 %v616_v6, %v615_v5 }
 0x17d   :  { %691 = vmatmul.mubr.f32.vlgmr.msra.gmra.mrb[2].mxu0 %v617_v7  ;;  %2142 = vmatmul.mubr.f32.vlgmr.msra.gmra.mrb[10].mxu1 %v617_v7 }
 0x17e   :  { %2533 = vmatpush1.bf16.msra.mxu0 %v3198_v17  ;;  %2564 = vmatpush3.bf16.msra.mxu1 %v3219_v41 }
 0x17f   :  { %2535 = vmatprep.subr.bf16.mxu0 %v3201_v18  ;;  %2565 = vmatprep.subr.bf16.mxu1 %v3107_v40 }
 0x180   :  { %860 = vmatprep.mubr.f32.mxu0 %v3106_v0  ;;  %2176 = vmatprep.mubr.msk.f32.mxu1 %vm3108_vm0, %v3106_v0 }
 0x182   :  { %2537 = vmatpush1.bf16.msra.mxu0 %v3206_v25  ;;  %2567 = vmatpush3.bf16.msra.mxu1 %v3229_v51 }
 0x183   :  { %2539 = vmatprep.subr.bf16.mxu0 %v3209_v26  ;;  %2568 = vmatprep.subr.bf16.mxu1 %v3107_v40 }
 0x186   :  { %2541 = vmatpush1.bf16.msra.mxu0 %v3213_v34  ;;  %2570 = vmatpush3.bf16.msra.mxu1 %v3240_v61 }
 0x187   :  { %2543 = vmatprep.subr.bf16.mxu0 %v3216_v35  ;;  %2571 = vmatprep.subr.bf16.mxu1 %v3107_v40 }
 0x18a   :  { %2545 = vmatpush1.bf16.msra.mxu0 %v3223_v45  ;;  %2573 = vmatpush3.bf16.msra.mxu1 %v3251_v10 }
 0x18b   :  { %2547 = vmatprep.subr.bf16.mxu0 %v3226_v46  ;;  %2574 = vmatprep.subr.bf16.mxu1 %v3107_v40 }
 0x18e   :  { %2549 = vmatpush1.bf16.msra.mxu0 %v3234_v55  ;;  %2576 = vmatpush3.bf16.msra.mxu1 %v3262_v20 }
 0x18f   :  { %2551 = vmatprep.subr.bf16.mxu0 %v3237_v56  ;;  %2577 = vmatprep.subr.bf16.mxu1 %v3107_v40 }
 0x192   :  { %2553 = vmatpush1.bf16.msra.mxu0 %v3245_v2  ;;  %2579 = vmatpush3.bf16.msra.mxu1 %v3273_v24 }
 0x193   :  { %2555 = vmatprep.subr.bf16.mxu0 %v3248_v4  ;;  %2580 = vmatprep.subr.bf16.mxu1 %v3107_v40 }
 0x196   :  { %2557 = vmatpush1.bf16.msra.mxu0 %v3256_v13  ;;  %2582 = vmatpush3.bf16.msra.mxu1 %v3280_v29 }
 0x197   :  { %2559 = vmatprep.subr.bf16.mxu0 %v3259_v15  ;;  %2583 = vmatprep.subr.bf16.mxu1 %v3107_v40 }
 0x19a   :  { %2561 = vmatpush1.bf16.msra.mxu0 %v3269_v23  ;;  %2585 = vmatpush3.bf16.msra.mxu1 %v3288_v32 }
 0x19b   :  { %2587 = vmatprep.subr.bf16.mxu0 %v3196_v9  ;;  %2618 = vmatprep.subr.bf16.mxu1 %v3107_v40 }
 0x250   :  { %v692_v37 = vpop.f32.mrb[2].mxu0  ;;  %v763_v39 = vpop.f32.mrb[10].mxu1 }
 0x251   :  { %v2871_v44 = vadd.f32 %v3346_v11, %v692_v37  ;;  %v694_v59 = vpop.f32.mrb[3].mxu0  ;;  %v2143_v8 = vpop.f32.mrb[11].mxu1  ;;  %v764_v30 = vadd.f32 %v763_v39, %v3352_v36 }
 0x252   :  { %v2873_v16 = vadd.f32 %v3348_v14, %v694_v59 }
 0x253   :  { %v1854_v12 = vmul.f32 -1.442695, %v2871_v44 }
 0x254   :  { %v1855_v19 = vmul.f32 -1.442695, %v2873_v16 }
 0x255   :  { %2935 = vpow2.f32 %v1854_v12 }
 0x256   :  { %2937 = vpow2.f32 %v1855_v19 }
 0x25f   :  { %v2936_v21 = vpop.eup %2935 }
 0x260   :  { %v771_v22 = vadd.f32 1.0, %v2936_v21  ;;  %v2938_v27 = vpop.eup %2937 }
 0x261   :  { %v778_v28 = vadd.f32 1.0, %v2938_v27 }
 0x262   :  { %2939 = vrcp.f32 %v771_v22 }
 0x263   :  { %2941 = vrcp.f32 %v778_v28 }
 0x26c   :  { %v2940_v31 = vpop.eup %2939 }
 0x26d   :  { %v781_v33 = vmul.f32 %v2940_v31, %v764_v30  ;;  %v2942_v42 = vpop.eup %2941 }
 0x26e   :  { %v784_v47 = vsub.f32 1.0, %v2942_v42  ;;  %v786_v54 = vmul.f32 %v2942_v42, %v617_v7 }
 0x26f   :  { %v782_v38 = vadd.f32 %v781_v33, %v3329_v43 }
 0x271   :  { %2943 = vtanh.f32 %v782_v38 }
 0x27b   :  { %v2944_v49 = vpop.eup %2943 }
 0x27c   :  { %v785_v52 = vmul.f32 %v2944_v49, %v784_v47 }
 0x27e   :  { %v787_v58 = vadd.f32 %v786_v54, %v785_v52 }
 0x280   :  { %861 = vmatmul.mubr.f32.vlgmr.msra.gmra.mrb[4].mxu0 %v787_v58  ;;  %2177 = vmatmul.mubr.f32.vlgmr.msra.gmra.mrb[12].mxu1 %v787_v58 }
 0x281   :  { %2589 = vmatpush1.bf16.msra.mxu0 %v3198_v17  ;;  %2620 = vmatpush3.bf16.msra.mxu1 %v3219_v41 }
 0x282   :  { %2591 = vmatprep.subr.bf16.mxu0 %v3201_v18  ;;  %2621 = vmatprep.subr.bf16.mxu1 %v3107_v40 }
 0x283   :  { %1030 = vmatprep.mubr.f32.mxu0 %v3106_v0  ;;  %2211 = vmatprep.mubr.msk.f32.mxu1 %vm3108_vm0, %v3106_v0 }
 0x285   :  { %2593 = vmatpush1.bf16.msra.mxu0 %v3206_v25  ;;  %2623 = vmatpush3.bf16.msra.mxu1 %v3229_v51 }
 0x286   :  { %2595 = vmatprep.subr.bf16.mxu0 %v3209_v26  ;;  %2624 = vmatprep.subr.bf16.mxu1 %v3107_v40 }
 0x289   :  { %2597 = vmatpush1.bf16.msra.mxu0 %v3213_v34  ;;  %2626 = vmatpush3.bf16.msra.mxu1 %v3240_v61 }
 0x28a   :  { %2599 = vmatprep.subr.bf16.mxu0 %v3216_v35  ;;  %2627 = vmatprep.subr.bf16.mxu1 %v3107_v40 }
 0x28d   :  { %2601 = vmatpush1.bf16.msra.mxu0 %v3223_v45  ;;  %2629 = vmatpush3.bf16.msra.mxu1 %v3251_v10 }
 0x28e   :  { %2603 = vmatprep.subr.bf16.mxu0 %v3226_v46  ;;  %2630 = vmatprep.subr.bf16.mxu1 %v3107_v40 }
 0x291   :  { %2605 = vmatpush1.bf16.msra.mxu0 %v3234_v55  ;;  %2632 = vmatpush3.bf16.msra.mxu1 %v3262_v20 }
 0x292   :  { %2607 = vmatprep.subr.bf16.mxu0 %v3237_v56  ;;  %2633 = vmatprep.subr.bf16.mxu1 %v3107_v40 }
 0x295   :  { %2609 = vmatpush1.bf16.msra.mxu0 %v3245_v2  ;;  %2635 = vmatpush3.bf16.msra.mxu1 %v3273_v24 }
 0x296   :  { %2611 = vmatprep.subr.bf16.mxu0 %v3248_v4  ;;  %2636 = vmatprep.subr.bf16.mxu1 %v3107_v40 }
 0x299   :  { %2613 = vmatpush1.bf16.msra.mxu0 %v3256_v13  ;;  %2638 = vmatpush3.bf16.msra.mxu1 %v3280_v29 }
 0x29a   :  { %2615 = vmatprep.subr.bf16.mxu0 %v3259_v15  ;;  %2639 = vmatprep.subr.bf16.mxu1 %v3107_v40 }
 0x29d   :  { %2617 = vmatpush1.bf16.msra.mxu0 %v3269_v23  ;;  %2641 = vmatpush3.bf16.msra.mxu1 %v3288_v32 }
 0x29e   :  { %2643 = vmatprep.subr.bf16.mxu0 %v3196_v9  ;;  %2674 = vmatprep.subr.bf16.mxu1 %v3107_v40 }
 0x353   :  { %v862_v43 = vpop.f32.mrb[4].mxu0  ;;  %v933_v60 = vpop.f32.mrb[12].mxu1 }
 0x354   :  { %v2875_v63 = vadd.f32 %v3346_v11, %v862_v43  ;;  %v864_v1 = vpop.f32.mrb[5].mxu0  ;;  %v2178_v5 = vpop.f32.mrb[13].mxu1  ;;  %v934_v12 = vadd.f32 %v933_v60, %v3352_v36 }
 0x355   :  { %v2877_v7 = vadd.f32 %v3348_v14, %v864_v1 }
 0x356   :  { %v1856_v6 = vmul.f32 -1.442695, %v2875_v63 }
 0x357   :  { %v1857_v37 = vmul.f32 -1.442695, %v2877_v7 }
 0x358   :  { %2945 = vpow2.f32 %v1856_v6 }
 0x359   :  { %2947 = vpow2.f32 %v1857_v37 }
 0x362   :  { %v2946_v39 = vpop.eup %2945 }
 0x363   :  { %v941_v44 = vadd.f32 1.0, %v2946_v39  ;;  %v2948_v59 = vpop.eup %2947 }
 0x364   :  { %v948_v8 = vadd.f32 1.0, %v2948_v59 }
 0x365   :  { %2949 = vrcp.f32 %v941_v44 }
 0x366   :  { %2951 = vrcp.f32 %v948_v8 }
 0x36f   :  { %v2950_v16 = vpop.eup %2949 }
 0x370   :  { %v951_v19 = vmul.f32 %v2950_v16, %v934_v12  ;;  %v2952_v22 = vpop.eup %2951 }
 0x371   :  { %v954_v27 = vsub.f32 1.0, %v2952_v22  ;;  %v956_v31 = vmul.f32 %v2952_v22, %v787_v58 }
 0x372   :  { %v952_v21 = vadd.f32 %v951_v19, %v3333_v50 }
 0x374   :  { %2953 = vtanh.f32 %v952_v21 }
 0x37e   :  { %v2954_v28 = vpop.eup %2953 }
 0x37f   :  { %v955_v30 = vmul.f32 %v2954_v28, %v954_v27 }
 0x381   :  { %v957_v33 = vadd.f32 %v956_v31, %v955_v30 }
 0x383   :  { %1031 = vmatmul.mubr.f32.vlgmr.msra.gmra.mrb[6].mxu0 %v957_v33  ;;  %2212 = vmatmul.mubr.f32.vlgmr.msra.gmra.mrb[14].mxu1 %v957_v33 }
 0x384   :  { %2645 = vmatpush1.bf16.msra.mxu0 %v3198_v17  ;;  %2676 = vmatpush3.bf16.msra.mxu1 %v3219_v41 }
 0x385   :  { %2647 = vmatprep.subr.bf16.mxu0 %v3201_v18  ;;  %2677 = vmatprep.subr.bf16.mxu1 %v3107_v40 }
 0x386   :  { %1200 = vmatprep.mubr.f32.mxu0 %v3106_v0  ;;  %2246 = vmatprep.mubr.msk.f32.mxu1 %vm3108_vm0, %v3106_v0 }
 0x388   :  { %2649 = vmatpush1.bf16.msra.mxu0 %v3206_v25  ;;  %2679 = vmatpush3.bf16.msra.mxu1 %v3229_v51 }
 0x389   :  { %2651 = vmatprep.subr.bf16.mxu0 %v3209_v26  ;;  %2680 = vmatprep.subr.bf16.mxu1 %v3107_v40 }
 0x38c   :  { %2653 = vmatpush1.bf16.msra.mxu0 %v3213_v34  ;;  %2682 = vmatpush3.bf16.msra.mxu1 %v3240_v61 }
 0x38d   :  { %2655 = vmatprep.subr.bf16.mxu0 %v3216_v35  ;;  %2683 = vmatprep.subr.bf16.mxu1 %v3107_v40 }
 0x390   :  { %2657 = vmatpush1.bf16.msra.mxu0 %v3223_v45  ;;  %2685 = vmatpush3.bf16.msra.mxu1 %v3251_v10 }
 0x391   :  { %2659 = vmatprep.subr.bf16.mxu0 %v3226_v46  ;;  %2686 = vmatprep.subr.bf16.mxu1 %v3107_v40 }
 0x394   :  { %2661 = vmatpush1.bf16.msra.mxu0 %v3234_v55  ;;  %2688 = vmatpush3.bf16.msra.mxu1 %v3262_v20 }
 0x395   :  { %2663 = vmatprep.subr.bf16.mxu0 %v3237_v56  ;;  %2689 = vmatprep.subr.bf16.mxu1 %v3107_v40 }
 0x398   :  { %2665 = vmatpush1.bf16.msra.mxu0 %v3245_v2  ;;  %2691 = vmatpush3.bf16.msra.mxu1 %v3273_v24 }
 0x399   :  { %2667 = vmatprep.subr.bf16.mxu0 %v3248_v4  ;;  %2692 = vmatprep.subr.bf16.mxu1 %v3107_v40 }
 0x39c   :  { %2669 = vmatpush1.bf16.msra.mxu0 %v3256_v13  ;;  %2694 = vmatpush3.bf16.msra.mxu1 %v3280_v29 }
 0x39d   :  { %2671 = vmatprep.subr.bf16.mxu0 %v3259_v15  ;;  %2695 = vmatprep.subr.bf16.mxu1 %v3107_v40 }
 0x3a0   :  { %2673 = vmatpush1.bf16.msra.mxu0 %v3269_v23  ;;  %2697 = vmatpush3.bf16.msra.mxu1 %v3288_v32 }
 0x3a1   :  { %2699 = vmatprep.subr.bf16.mxu0 %v3196_v9  ;;  %2730 = vmatprep.subr.bf16.mxu1 %v3107_v40 }
 0x456   :  { %v1032_v50 = vpop.f32.mrb[6].mxu0  ;;  %v1103_v38 = vpop.f32.mrb[14].mxu1 }
 0x457   :  { %v2879_v42 = vadd.f32 %v3346_v11, %v1032_v50  ;;  %v1034_v47 = vpop.f32.mrb[7].mxu0  ;;  %v2213_v49 = vpop.f32.mrb[15].mxu1  ;;  %v1104_v5 = vadd.f32 %v1103_v38, %v3352_v36 }
 0x458   :  { %v2881_v54 = vadd.f32 %v3348_v14, %v1034_v47 }
 0x459   :  { %v1858_v52 = vmul.f32 -1.442695, %v2879_v42 }
 0x45a   :  { %v1859_v58 = vmul.f32 -1.442695, %v2881_v54 }
 0x45b   :  { %2955 = vpow2.f32 %v1858_v52 }
 0x45c   :  { %2957 = vpow2.f32 %v1859_v58 }
 0x465   :  { %v2956_v43 = vpop.eup %2955 }
 0x466   :  { %v1111_v60 = vadd.f32 1.0, %v2956_v43  ;;  %v2958_v63 = vpop.eup %2957 }
 0x467   :  { %v1118_v1 = vadd.f32 1.0, %v2958_v63 }
 0x468   :  { %2959 = vrcp.f32 %v1111_v60 }
 0x469   :  { %2961 = vrcp.f32 %v1118_v1 }
 0x472   :  { %v2960_v6 = vpop.eup %2959 }
 0x473   :  { %v1121_v7 = vmul.f32 %v2960_v6, %v1104_v5  ;;  %v2962_v39 = vpop.eup %2961 }
 0x474   :  { %v1124_v44 = vsub.f32 1.0, %v2962_v39  ;;  %v1126_v12 = vmul.f32 %v2962_v39, %v957_v33 }
 0x475   :  { %v1122_v37 = vadd.f32 %v1121_v7, %v3331_v48 }
 0x477   :  { %2963 = vtanh.f32 %v1122_v37 }
 0x481   :  { %v2964_v59 = vpop.eup %2963 }
 0x482   :  { %v1125_v8 = vmul.f32 %v2964_v59, %v1124_v44 }
 0x484   :  { %v1127_v16 = vadd.f32 %v1126_v12, %v1125_v8 }
 0x486   :  { %1201 = vmatmul.mubr.f32.vlgmr.msra.gmra.mrb[8].mxu0 %v1127_v16  ;;  %2247 = vmatmul.mubr.f32.vlgmr.msra.gmra.mrb[16].mxu1 %v1127_v16 }
 0x487   :  { %2701 = vmatpush1.bf16.msra.mxu0 %v3198_v17  ;;  %2732 = vmatpush3.bf16.msra.mxu1 %v3219_v41 }
 0x488   :  { %2703 = vmatprep.subr.bf16.mxu0 %v3201_v18  ;;  %2733 = vmatprep.subr.bf16.mxu1 %v3107_v40 }
 0x489   :  { %1370 = vmatprep.mubr.f32.mxu0 %v3106_v0  ;;  %2281 = vmatprep.mubr.msk.f32.mxu1 %vm3108_vm0, %v3106_v0 }
 0x48b   :  { %2705 = vmatpush1.bf16.msra.mxu0 %v3206_v25  ;;  %2735 = vmatpush3.bf16.msra.mxu1 %v3229_v51 }
 0x48c   :  { %2707 = vmatprep.subr.bf16.mxu0 %v3209_v26  ;;  %2736 = vmatprep.subr.bf16.mxu1 %v3107_v40 }
 0x48f   :  { %2709 = vmatpush1.bf16.msra.mxu0 %v3213_v34  ;;  %2738 = vmatpush3.bf16.msra.mxu1 %v3240_v61 }
 0x490   :  { %2711 = vmatprep.subr.bf16.mxu0 %v3216_v35  ;;  %2739 = vmatprep.subr.bf16.mxu1 %v3107_v40 }
 0x493   :  { %2713 = vmatpush1.bf16.msra.mxu0 %v3223_v45  ;;  %2741 = vmatpush3.bf16.msra.mxu1 %v3251_v10 }
 0x494   :  { %2715 = vmatprep.subr.bf16.mxu0 %v3226_v46  ;;  %2742 = vmatprep.subr.bf16.mxu1 %v3107_v40 }
 0x497   :  { %2717 = vmatpush1.bf16.msra.mxu0 %v3234_v55  ;;  %2744 = vmatpush3.bf16.msra.mxu1 %v3262_v20 }
 0x498   :  { %2719 = vmatprep.subr.bf16.mxu0 %v3237_v56  ;;  %2745 = vmatprep.subr.bf16.mxu1 %v3107_v40 }
 0x49b   :  { %2721 = vmatpush1.bf16.msra.mxu0 %v3245_v2  ;;  %2747 = vmatpush3.bf16.msra.mxu1 %v3273_v24 }
 0x49c   :  { %2723 = vmatprep.subr.bf16.mxu0 %v3248_v4  ;;  %2748 = vmatprep.subr.bf16.mxu1 %v3107_v40 }
 0x49f   :  { %2725 = vmatpush1.bf16.msra.mxu0 %v3256_v13  ;;  %2750 = vmatpush3.bf16.msra.mxu1 %v3280_v29 }
 0x4a0   :  { %2727 = vmatprep.subr.bf16.mxu0 %v3259_v15  ;;  %2751 = vmatprep.subr.bf16.mxu1 %v3107_v40 }
 0x4a3   :  { %2729 = vmatpush1.bf16.msra.mxu0 %v3269_v23  ;;  %2753 = vmatpush3.bf16.msra.mxu1 %v3288_v32 }
 0x4a4   :  { %2755 = vmatprep.subr.bf16.mxu0 %v3196_v9  ;;  %2786 = vmatprep.subr.bf16.mxu1 %v3107_v40 }
 0x559   :  { %v1202_v48 = vpop.f32.mrb[8].mxu0  ;;  %v1273_v19 = vpop.f32.mrb[16].mxu1 }
 0x55a   :  { %v2883_v21 = vadd.f32 %v3346_v11, %v1202_v48  ;;  %v1204_v22 = vpop.f32.mrb[9].mxu0  ;;  %v2248_v27 = vpop.f32.mrb[17].mxu1  ;;  %v1274_v47 = vadd.f32 %v1273_v19, %v3352_v36 }
 0x55b   :  { %v2885_v30 = vadd.f32 %v3348_v14, %v1204_v22 }
 0x55c   :  { %v1860_v28 = vmul.f32 -1.442695, %v2883_v21 }
 0x55d   :  { %v1861_v31 = vmul.f32 -1.442695, %v2885_v30 }
 0x55e   :  { %2965 = vpow2.f32 %v1860_v28 }
 0x55f   :  { %2967 = vpow2.f32 %v1861_v31 }
 0x568   :  { %v2966_v33 = vpop.eup %2965 }
 0x569   :  { %v1281_v50 = vadd.f32 1.0, %v2966_v33  ;;  %v2968_v38 = vpop.eup %2967 }
 0x56a   :  { %v1288_v42 = vadd.f32 1.0, %v2968_v38 }
 0x56b   :  { %2969 = vrcp.f32 %v1281_v50 }
 0x56c   :  { %2971 = vrcp.f32 %v1288_v42 }
 0x575   :  { %v2970_v49 = vpop.eup %2969 }
 0x576   :  { %v1291_v52 = vmul.f32 %v2970_v49, %v1274_v47  ;;  %v2972_v58 = vpop.eup %2971 }
 0x577   :  { %v1294_v43 = vsub.f32 1.0, %v2972_v58  ;;  %v1296_v1 = vmul.f32 %v2972_v58, %v1127_v16 }
 0x578   :  { %v1292_v54 = vadd.f32 %v1291_v52, %v3337_v57 }
 0x57a   :  { %2973 = vtanh.f32 %v1292_v54 }
 0x584   :  { %v2974_v60 = vpop.eup %2973 }
 0x585   :  { %v1295_v63 = vmul.f32 %v2974_v60, %v1294_v43 }
 0x587   :  { %v1297_v5 = vadd.f32 %v1296_v1, %v1295_v63 }
 0x589   :  { %1371 = vmatmul.mubr.f32.vlgmr.msra.gmra.mrb[10].mxu0 %v1297_v5  ;;  %2282 = vmatmul.mubr.f32.vlgmr.msra.gmra.mrb[18].mxu1 %v1297_v5 }
 0x58a   :  { %2757 = vmatpush1.bf16.msra.mxu0 %v3198_v17  ;;  %2788 = vmatpush3.bf16.msra.mxu1 %v3219_v41 }
 0x58b   :  { %2759 = vmatprep.subr.bf16.mxu0 %v3201_v18  ;;  %2789 = vmatprep.subr.bf16.mxu1 %v3107_v40 }
 0x58c   :  { %1540 = vmatprep.mubr.f32.mxu0 %v3106_v0  ;;  %2316 = vmatprep.mubr.msk.f32.mxu1 %vm3108_vm0, %v3106_v0 }
 0x58e   :  { %2761 = vmatpush1.bf16.msra.mxu0 %v3206_v25  ;;  %2791 = vmatpush3.bf16.msra.mxu1 %v3229_v51 }
 0x58f   :  { %2763 = vmatprep.subr.bf16.mxu0 %v3209_v26  ;;  %2792 = vmatprep.subr.bf16.mxu1 %v3107_v40 }
 0x592   :  { %2765 = vmatpush1.bf16.msra.mxu0 %v3213_v34  ;;  %2794 = vmatpush3.bf16.msra.mxu1 %v3240_v61 }
 0x593   :  { %2767 = vmatprep.subr.bf16.mxu0 %v3216_v35  ;;  %2795 = vmatprep.subr.bf16.mxu1 %v3107_v40 }
 0x596   :  { %2769 = vmatpush1.bf16.msra.mxu0 %v3223_v45  ;;  %2797 = vmatpush3.bf16.msra.mxu1 %v3251_v10 }
 0x597   :  { %2771 = vmatprep.subr.bf16.mxu0 %v3226_v46  ;;  %2798 = vmatprep.subr.bf16.mxu1 %v3107_v40 }
 0x59a   :  { %2773 = vmatpush1.bf16.msra.mxu0 %v3234_v55  ;;  %2800 = vmatpush3.bf16.msra.mxu1 %v3262_v20 }
 0x59b   :  { %2775 = vmatprep.subr.bf16.mxu0 %v3237_v56  ;;  %2801 = vmatprep.subr.bf16.mxu1 %v3107_v40 }
 0x59e   :  { %2777 = vmatpush1.bf16.msra.mxu0 %v3245_v2  ;;  %2803 = vmatpush3.bf16.msra.mxu1 %v3273_v24 }
 0x59f   :  { %2779 = vmatprep.subr.bf16.mxu0 %v3248_v4  ;;  %2804 = vmatprep.subr.bf16.mxu1 %v3107_v40 }
 0x5a2   :  { %2781 = vmatpush1.bf16.msra.mxu0 %v3256_v13  ;;  %2806 = vmatpush3.bf16.msra.mxu1 %v3280_v29 }
 0x5a3   :  { %2783 = vmatprep.subr.bf16.mxu0 %v3259_v15  ;;  %2807 = vmatprep.subr.bf16.mxu1 %v3107_v40 }
 0x5a6   :  { %2785 = vmatpush1.bf16.msra.mxu0 %v3269_v23  ;;  %2809 = vmatpush3.bf16.msra.mxu1 %v3288_v32 }
 0x5a7   :  { %2811 = vmatprep.subr.bf16.mxu0 %v3196_v9  ;;  %2842 = vmatprep.subr.bf16.mxu1 %v3107_v40 }
 0x65c   :  { %v1372_v57 = vpop.f32.mrb[10].mxu0  ;;  %v1443_v6 = vpop.f32.mrb[18].mxu1 }
 0x65d   :  { %v2887_v7 = vadd.f32 %v3346_v11, %v1372_v57  ;;  %v1374_v37 = vpop.f32.mrb[11].mxu0  ;;  %v2283_v39 = vpop.f32.mrb[19].mxu1  ;;  %v1444_v9 = vadd.f32 %v1443_v6, %v3352_v36 }
 0x65e   :  { %v2889_v59 = vadd.f32 %v3348_v14, %v1374_v37  ;;  %v1868_v37 = vld [vmem:[%s3614_s5] ss:$0 sm:$0xff] }
 0x65f   :  { %v1862_v44 = vmul.f32 -1.442695, %v2887_v7 }
 0x660   :  { %v1863_v8 = vmul.f32 -1.442695, %v2889_v59 }
 0x661   :  { %2975 = vpow2.f32 %v1862_v44 }
 0x662   :  { %2977 = vpow2.f32 %v1863_v8 }
 0x66b   :  { %v2976_v12 = vpop.eup %2975 }
 0x66c   :  { %v1451_v16 = vadd.f32 1.0, %v2976_v12  ;;  %v2978_v48 = vpop.eup %2977 }
 0x66d   :  { %v1458_v19 = vadd.f32 1.0, %v2978_v48 }
 0x66e   :  { %2979 = vrcp.f32 %v1451_v16 }
 0x66f   :  { %2981 = vrcp.f32 %v1458_v19 }
 0x678   :  { %v2980_v21 = vpop.eup %2979 }
 0x679   :  { %v1461_v22 = vmul.f32 %v2980_v21, %v1444_v9  ;;  %v2982_v28 = vpop.eup %2981 }
 0x67a   :  { %v1464_v30 = vsub.f32 1.0, %v2982_v28  ;;  %v1466_v50 = vmul.f32 %v2982_v28, %v1297_v5 }
 0x67b   :  { %v1462_v27 = vadd.f32 %v1461_v22, %v3335_v53 }
 0x67d   :  { %2983 = vtanh.f32 %v1462_v27 }
 0x687   :  { %v2984_v31 = vpop.eup %2983 }
 0x688   :  { %v1465_v33 = vmul.f32 %v2984_v31, %v1464_v30 }
 0x68a   :  { %v1467_v38 = vadd.f32 %v1466_v50, %v1465_v33 }
 0x68c   :  { %1541 = vmatmul.mubr.f32.vlgmr.msra.gmra.mrb[12].mxu0 %v1467_v38  ;;  %2317 = vmatmul.mubr.f32.vlgmr.msra.gmra.mrb[20].mxu1 %v1467_v38 }
 0x68d   :  { %2813 = vmatpush1.bf16.msra.mxu0 %v3198_v17  ;;  %2844 = vmatpush3.bf16.msra.mxu1 %v3219_v41 }
 0x68e   :  { %2815 = vmatprep.subr.bf16.mxu0 %v3201_v18  ;;  %2845 = vmatprep.subr.bf16.mxu1 %v3107_v40 }
 0x68f   :  { %1710 = vmatprep.mubr.f32.mxu0 %v3106_v0  ;;  %2351 = vmatprep.mubr.msk.f32.mxu1 %vm3108_vm0, %v3106_v0 }
 0x691   :  { %2817 = vmatpush1.bf16.msra.mxu0 %v3206_v25  ;;  %2847 = vmatpush3.bf16.msra.mxu1 %v3229_v51 }
 0x692   :  { %2819 = vmatprep.subr.bf16.mxu0 %v3209_v26  ;;  %2848 = vmatprep.subr.bf16.mxu1 %v3107_v40 }
 0x695   :  { %2821 = vmatpush1.bf16.msra.mxu0 %v3213_v34  ;;  %2850 = vmatpush3.bf16.msra.mxu1 %v3240_v61 }
 0x696   :  { %2823 = vmatprep.subr.bf16.mxu0 %v3216_v35  ;;  %2851 = vmatprep.subr.bf16.mxu1 %v3107_v40 }
 0x699   :  { %2825 = vmatpush1.bf16.msra.mxu0 %v3223_v45  ;;  %2853 = vmatpush3.bf16.msra.mxu1 %v3251_v10 }
 0x69a   :  { %2827 = vmatprep.subr.bf16.mxu0 %v3226_v46  ;;  %2854 = vmatprep.subr.bf16.mxu1 %v3107_v40 }
 0x69d   :  { %2829 = vmatpush1.bf16.msra.mxu0 %v3234_v55  ;;  %2856 = vmatpush3.bf16.msra.mxu1 %v3262_v20 }
 0x69e   :  { %2831 = vmatprep.subr.bf16.mxu0 %v3237_v56  ;;  %2857 = vmatprep.subr.bf16.mxu1 %v3107_v40 }
 0x6a1   :  { %2833 = vmatpush1.bf16.msra.mxu0 %v3245_v2  ;;  %2859 = vmatpush3.bf16.msra.mxu1 %v3273_v24 }
 0x6a2   :  { %2835 = vmatprep.subr.bf16.mxu0 %v3248_v4  ;;  %2860 = vmatprep.subr.bf16.mxu1 %v3107_v40 }
 0x6a5   :  { %2837 = vmatpush1.bf16.msra.mxu0 %v3256_v13  ;;  %2862 = vmatpush3.bf16.msra.mxu1 %v3280_v29 }
 0x6a6   :  { %2839 = vmatprep.subr.bf16.mxu0 %v3259_v15  ;;  %2863 = vmatprep.subr.bf16.mxu1 %v3107_v40 }
 0x6a9   :  { %2841 = vmatpush1.bf16.msra.mxu0 %v3269_v23  ;;  %2865 = vmatpush3.bf16.msra.mxu1 %v3288_v32 }
 0x75f   :  { %v1542_v0 = vpop.f32.mrb[12].mxu0  ;;  %v1613_v17 = vpop.f32.mrb[20].mxu1 }
 0x760   :  { %v2891_v18 = vadd.f32 %v3346_v11, %v1542_v0  ;;  %v1544_v25 = vpop.f32.mrb[13].mxu0  ;;  %v2318_v26 = vpop.f32.mrb[21].mxu1  ;;  %v1614_v55 = vadd.f32 %v1613_v17, %v3352_v36 }
 0x761   :  { %v2893_v35 = vadd.f32 %v3348_v14, %v1544_v25 }
 0x762   :  { %v1864_v34 = vmul.f32 -1.442695, %v2891_v18 }
 0x763   :  { %v1865_v41 = vmul.f32 -1.442695, %v2893_v35 }
 0x764   :  { %2985 = vpow2.f32 %v1864_v34 }
 0x765   :  { %2987 = vpow2.f32 %v1865_v41 }
 0x76e   :  { %v2986_v45 = vpop.eup %2985 }
 0x76f   :  { %v1621_v46 = vadd.f32 1.0, %v2986_v45  ;;  %v2988_v40 = vpop.eup %2987 }
 0x770   :  { %v1628_v51 = vadd.f32 1.0, %v2988_v40 }
 0x771   :  { %2989 = vrcp.f32 %v1621_v46 }
 0x772   :  { %2991 = vrcp.f32 %v1628_v51 }
 0x77b   :  { %v2990_v56 = vpop.eup %2989 }
 0x77c   :  { %v1631_v61 = vmul.f32 %v2990_v56, %v1614_v55  ;;  %v2992_v4 = vpop.eup %2991 }
 0x77d   :  { %v1634_v10 = vsub.f32 1.0, %v2992_v4  ;;  %v1636_v20 = vmul.f32 %v2992_v4, %v1467_v38 }
 0x77e   :  { %v1632_v2 = vadd.f32 %v1631_v61, %v3344_v3 }
 0x780   :  { %2993 = vtanh.f32 %v1632_v2 }
 0x78a   :  { %v2994_v13 = vpop.eup %2993 }
 0x78b   :  { %v1635_v15 = vmul.f32 %v2994_v13, %v1634_v10 }
 0x78d   :  { %v1637_v23 = vadd.f32 %v1636_v20, %v1635_v15 }
 0x78f   :  { %1711 = vmatmul.mubr.f32.vlgmr.msra.gmra.mrb[14].mxu0 %v1637_v23  ;;  %2352 = vmatmul.mubr.f32.vlgmr.msra.gmra.mrb[22].mxu1 %v1637_v23 }
 0x862   :  { %v1712_v24 = vpop.f32.mrb[14].mxu0  ;;  %v1783_v29 = vpop.f32.mrb[22].mxu1 }
 0x863   :  { %v2895_v32 = vadd.f32 %v3346_v11, %v1712_v24  ;;  %v1714_v53 = vpop.f32.mrb[15].mxu0  ;;  %v2353_v42 = vpop.f32.mrb[23].mxu1  ;;  %v1784_v60 = vadd.f32 %v1783_v29, %v3352_v36  ;;  %v1869_v36 = vld [vmem:[%s3615_s6] ss:$0 sm:$0xff] }
 0x864   :  { %v2897_v49 = vadd.f32 %v3348_v14, %v1714_v53 }
 0x865   :  { %v1866_v47 = vmul.f32 -1.442695, %v2895_v32 }
 0x866   :  { %v1867_v3 = vmul.f32 -1.442695, %v2897_v49 }
 0x867   :  { %2995 = vpow2.f32 %v1866_v47 }
 0x868   :  { %2997 = vpow2.f32 %v1867_v3 }
 0x871   :  { %v2996_v52 = vpop.eup %2995 }
 0x872   :  { %v1791_v54 = vadd.f32 1.0, %v2996_v52  ;;  %v2998_v58 = vpop.eup %2997 }
 0x873   :  { %v1798_v43 = vadd.f32 1.0, %v2998_v58 }
 0x874   :  { %2999 = vrcp.f32 %v1791_v54 }
 0x875   :  { %3001 = vrcp.f32 %v1798_v43 }
 0x87e   :  { %v3000_v63 = vpop.eup %2999 }
 0x87f   :  { %v1801_v1 = vmul.f32 %v3000_v63, %v1784_v60  ;;  %v3002_v5 = vpop.eup %3001 }
 0x880   :  { %v1804_v57 = vsub.f32 1.0, %v3002_v5  ;;  %v1806_v7 = vmul.f32 %v3002_v5, %v1637_v23 }
 0x881   :  { %v1802_v11 = vadd.f32 %v1801_v1, %v3342_v62 }
 0x883   :  { %3003 = vtanh.f32 %v1802_v11 }
 0x88d   :  { %v3004_v6 = vpop.eup %3003 }
 0x88e   :  { %v1805_v14 = vmul.f32 %v3004_v6, %v1804_v57 }
 0x890   :  { %v1807_v39 = vadd.f32 %v1806_v7, %v1805_v14 }
 0x892   :  { %v1817_v44 = vmul.f32 %v1868_v37, %v1807_v39 }
 0x894   :  { %1818 = vadd.xlane.f32.xlu0 %v1817_v44 }
 0x921   :  { %v1819_v62 = vpop.xlane.xlu0 %1818 }
 0x922   :  { %v1827_v59 = vadd.f32 %v1869_v36, %v1819_v62 }
 0x924   :  { %1828 = vst [vmem:[#allocation10] sm:$0xff] %v1827_v59 }
 0x925   :  { %3082 = shalt.err (!%p3079_p0)
}
 0x926   :  { %s3083_s1 = scalar_lea.hbm %s3616_s7, 128 }
 0x927   :  { %p3084_p1 = scmp.ne.s32.totalorder %s3616_s7, %s3083_s1  ;;  %p3087_p2 = scmp.lt.u32.totalorder %s3083_s1, %s3616_s7 }
 0x929   :  { %p3089_p3 = pnand %p3087_p2, %p3084_p1 }
 0x92b   :  { %3092 = shalt.err (!%p3089_p3)
}
 0x92c   :  { %1838 = dma.vmem_to_hbm [thread:$0]  %s1836_s22, 128, %s3616_s7, [#allocation6]  }
 0x92d   :  { %3097 = dma.done.wait [#allocation6], 128  }
 0x92e   :  { %3098 = vsyncadd [#allocation6], 4294967168 }
 0x92f   :  { %1842 = vsyncpa [#allocation5], 1 }
 0x930   :  { %1843 = vsyncpa [#allocation8], 1 }
 0x931   :  { %1844 = vsyncpa [#allocation6], 1 }

</bundles_post_ra>
